<compile_context>
chip_gen: v6e
topology: v6e:2x2x1
jax: 0.10.0
libtpu: 0.0.40
codegen_flags: <defaults>
</compile_context>

<pallas_src>
import jax
import jax.numpy as jnp
from jax.experimental import pallas as pl
from jax.experimental.pallas import tpu as pltpu

IN_FEATURES = 2000
HIDDEN = 512
OUT_FEATURES = 1
NEG_SLOPE = 0.1


def _disc_kernel(x_ref, w1_ref, b1_ref, w2_ref, b2_ref, o_ref):
    # In-kernel cast to bf16 (VPU) -- x arrives in its original dtype, read from HBM once.
    x_bf = x_ref[...].astype(jnp.bfloat16)
    # fc1 on the MXU: (TM, 2000) bf16 @ (2000, 512) bf16 -> f32 accumulate.
    h = jnp.dot(x_bf, w1_ref[...], preferred_element_type=jnp.float32)
    h = h + b1_ref[...]
    # LeakyReLU(0.1) on the VPU.
    h = jnp.where(h > 0, h, NEG_SLOPE * h)
    # fc2 (N == 1) as a VPU broadcast-multiply + lane reduction (keeps the MXU free).
    y = jnp.sum(h * w2_ref[...], axis=-1, keepdims=True) + b2_ref[...]
    # Sigmoid (EUP exp; exp overflow for very negative y saturates correctly to 0).
    o_ref[...] = 1.0 / (1.0 + jnp.exp(-y))


def _round_up(n, m):
    return ((n + m - 1) // m) * m


def _pick_tile(batch, block_rows):
    """Batch tile selection.

    * batch < 32: one tile equal to the full batch dim (block dim == array dim is
      always a legal block shape; no padding, no partial blocks).
    * batch >= 32: multiple of 16 (bf16 sublane packing) and at most half the batch,
      so the grid has >= 2 steps and both v7x TensorCores get work.
    """
    if batch < 32:
        return max(batch, 1)
    return min(block_rows, _round_up(pl.cdiv(batch, 2), 16))


def discriminator_forward(x, w1, b1, w2, b2, *, block_rows=512):
    """x: any shape with total elements divisible by 2000 (like torch .view(-1, 2000)).

    w1: (2000, 512), b1: (512,), w2: (512, 1), b2: (1,)   [W stored as (in, out)].
    """
    x2d = jnp.reshape(x, (-1, IN_FEATURES))
    batch = x2d.shape[0]

    tm = _pick_tile(batch, block_rows)
    grid = (pl.cdiv(batch, tm),)

    # Only the weights are pre-cast to bf16 (tiny, one-time); x goes in as-is.
    w1_bf = w1.astype(jnp.bfloat16)
    b1_row = jnp.reshape(b1, (1, HIDDEN)).astype(jnp.float32)
    w2_row = jnp.reshape(w2, (1, HIDDEN)).astype(jnp.float32)
    b2_sc = jnp.reshape(b2, (1, OUT_FEATURES)).astype(jnp.float32)

    # Constant index_maps -> fetched once and VMEM-resident; single buffer (no point
    # double-buffering a block that never changes).
    resident = pl.Buffered(1)

    out = pl.pallas_call(
        _disc_kernel,
        out_shape=jax.ShapeDtypeStruct((batch, OUT_FEATURES), jnp.float32),
        grid=grid,
        in_specs=[
            pl.BlockSpec((tm, IN_FEATURES), lambda i: (i, 0)),
            pl.BlockSpec((IN_FEATURES, HIDDEN), lambda i: (0, 0), pipeline_mode=resident),
            pl.BlockSpec((1, HIDDEN), lambda i: (0, 0), pipeline_mode=resident),
            pl.BlockSpec((1, HIDDEN), lambda i: (0, 0), pipeline_mode=resident),
            pl.BlockSpec((1, OUT_FEATURES), lambda i: (0, 0), pipeline_mode=resident),
        ],
        out_specs=pl.BlockSpec((tm, OUT_FEATURES), lambda i: (i, 0)),
        compiler_params=pltpu.CompilerParams(
            dimension_semantics=("parallel",),
            # tm=512: ~7.8 MiB double-buffered f32 x tiles + ~2 MiB resident bf16 w1
            # + ~3 MiB in-kernel temps -> 32 MiB covers it with headroom on every chip
            # (v5e/v6e 128 MiB physical, v7x 64 MiB physical).
            vmem_limit_bytes=32 * 1024 * 1024,
        ),
    )(x2d, w1_bf, b1_row, w2_row, b2_sc)

    return out


def init_params(key):
    """Deterministic init mimicking nn.Linear default (uniform(-1/sqrt(fan_in), ...))."""
    k1, k2, k3, k4 = jax.random.split(key, 4)
    bound1 = 1.0 / jnp.sqrt(jnp.float32(IN_FEATURES))
    bound2 = 1.0 / jnp.sqrt(jnp.float32(HIDDEN))
    w1 = jax.random.uniform(k1, (IN_FEATURES, HIDDEN), jnp.float32, -bound1, bound1)
    b1 = jax.random.uniform(k2, (HIDDEN,), jnp.float32, -bound1, bound1)
    w2 = jax.random.uniform(k3, (HIDDEN, OUT_FEATURES), jnp.float32, -bound2, bound2)
    b2 = jax.random.uniform(k4, (OUT_FEATURES,), jnp.float32, -bound2, bound2)
    return w1, b1, w2, b2


def _reference(x, w1, b1, w2, b2):
    """Pure-JAX reference with the same bf16-matmul / f32-accumulate contract as the kernel.

    NOTE: the bf16 x@w1 means outputs differ from a pure-f32 PyTorch forward by roughly
    1e-3 relative; this is the intended precision contract of the kernel.
    """
    x2d = jnp.reshape(x, (-1, IN_FEATURES)).astype(jnp.bfloat16)
    h = jnp.dot(x2d, w1.astype(jnp.bfloat16), preferred_element_type=jnp.float32) + b1
    h = jnp.where(h > 0, h, NEG_SLOPE * h)
    y = h @ w2 + b2
    return jax.nn.sigmoid(y)


if __name__ == "__main__":
    key = jax.random.PRNGKey(0)
    kx1, kx2, kp = jax.random.split(key, 3)
    w1, b1, w2, b2 = init_params(kp)

    # Case 1: small non-2D input -> exercises .view(-1, 2000) with a single full-batch tile.
    x_small = jax.random.normal(kx1, (4, 2, 1000), jnp.float32)
    out_small = jax.block_until_ready(discriminator_forward(x_small, w1, b1, w2, b2))
    ref_small = _reference(x_small, w1, b1, w2, b2)
    assert out_small.shape == (4, OUT_FEATURES)
    assert jnp.allclose(out_small, ref_small, atol=2e-4, rtol=2e-4)

    # Case 2: batch=50 -> 2 grid steps (both v7x cores active) + a partial trailing tile.
    x_big = jax.random.normal(kx2, (50, IN_FEATURES), jnp.float32)
    out_big = jax.block_until_ready(discriminator_forward(x_big, w1, b1, w2, b2))
    ref_big = _reference(x_big, w1, b1, w2, b2)
    assert out_big.shape == (50, OUT_FEATURES)
    assert jnp.allclose(out_big, ref_big, atol=2e-4, rtol=2e-4)

    print("KERNEL_OK")
</pallas_src>

<mosaic_0001>
module attributes {stable_mosaic.version = 11 : i64} {
  func.func @_disc_kernel(%arg0: i32, %arg1: memref<4x2000xf32, #tpu.memory_space<vmem>>, %arg2: memref<2000x512xbf16, #tpu.memory_space<vmem>>, %arg3: memref<1x512xf32, #tpu.memory_space<vmem>>, %arg4: memref<1x512xf32, #tpu.memory_space<vmem>>, %arg5: memref<1x1xf32, #tpu.memory_space<vmem>>, %arg6: memref<4x1xf32, #tpu.memory_space<vmem>>) attributes {dimension_semantics = [#tpu.dimension_semantics<parallel>], iteration_bounds = array<i64: 1>, scalar_prefetch = 0 : i64, scratch_operands = 0 : i64, tpu.core_type = #tpu.core_type<tc>, window_params = [{transform_indices = @transform_0, window_bounds = array<i64: 4, 2000>}, {pipeline_mode = #tpu.pipeline_mode<synchronous>, transform_indices = @transform_1, window_bounds = array<i64: 2000, 512>}, {pipeline_mode = #tpu.pipeline_mode<synchronous>, transform_indices = @transform_2, window_bounds = array<i64: 1, 512>}, {pipeline_mode = #tpu.pipeline_mode<synchronous>, transform_indices = @transform_3, window_bounds = array<i64: 1, 512>}, {pipeline_mode = #tpu.pipeline_mode<synchronous>, transform_indices = @transform_4, window_bounds = array<i64: 1, 1>}, {transform_indices = @transform_5, window_bounds = array<i64: 4, 1>}]} {
    %c0 = arith.constant 0 : index
    %c0_0 = arith.constant 0 : index
    %0 = vector.load %arg1[%c0, %c0_0] : memref<4x2000xf32, #tpu.memory_space<vmem>>, vector<4x2000xf32>
    %1 = arith.truncf %0 : vector<4x2000xf32> to vector<4x2000xbf16>
    %c0_1 = arith.constant 0 : index
    %c0_2 = arith.constant 0 : index
    %2 = vector.load %arg2[%c0_1, %c0_2] : memref<2000x512xbf16, #tpu.memory_space<vmem>>, vector<2000x512xbf16>
    %cst = arith.constant dense<0.000000e+00> : vector<4x512xf32>
    %3 = tpu.matmul %1, %2, %cst {dimension_numbers = #tpu.dot_dimension_numbers<[1], [0], [0], [1], [0, 0, 1, 1], [], []>} : vector<4x2000xbf16>, vector<2000x512xbf16>, vector<4x512xf32> -> vector<4x512xf32>
    %c0_3 = arith.constant 0 : index
    %c0_4 = arith.constant 0 : index
    %4 = vector.load %arg3[%c0_3, %c0_4] : memref<1x512xf32, #tpu.memory_space<vmem>>, vector<1x512xf32>
    %5 = vector.broadcast %4 : vector<1x512xf32> to vector<4x512xf32>
    %6 = arith.addf %3, %5 : vector<4x512xf32>
    %cst_5 = arith.constant 0.000000e+00 : f32
    %7 = vector.broadcast %cst_5 : f32 to vector<4x512xf32>
    %8 = arith.cmpf ogt, %6, %7 : vector<4x512xf32>
    %cst_6 = arith.constant 1.000000e-01 : f32
    %9 = vector.broadcast %cst_6 : f32 to vector<4x512xf32>
    %10 = arith.mulf %9, %6 : vector<4x512xf32>
    %11 = arith.select %8, %6, %10 : vector<4x512xi1>, vector<4x512xf32>
    %c0_7 = arith.constant 0 : index
    %c0_8 = arith.constant 0 : index
    %12 = vector.load %arg4[%c0_7, %c0_8] : memref<1x512xf32, #tpu.memory_space<vmem>>, vector<1x512xf32>
    %13 = vector.broadcast %12 : vector<1x512xf32> to vector<4x512xf32>
    %14 = arith.mulf %11, %13 : vector<4x512xf32>
    %cst_9 = arith.constant dense<0.000000e+00> : vector<4xf32>
    %15 = vector.multi_reduction <add>, %14, %cst_9 [1] : vector<4x512xf32> to vector<4xf32>
    %16 = vector.shape_cast %15 : vector<4xf32> to vector<4x1xf32>
    %c0_10 = arith.constant 0 : index
    %c0_11 = arith.constant 0 : index
    %17 = vector.load %arg5[%c0_10, %c0_11] : memref<1x1xf32, #tpu.memory_space<vmem>>, vector<1x1xf32>
    %18 = vector.broadcast %17 : vector<1x1xf32> to vector<4x1xf32>
    %19 = arith.addf %16, %18 : vector<4x1xf32>
    %cst_12 = arith.constant 0.000000e+00 : f32
    %20 = vector.broadcast %cst_12 : f32 to vector<4x1xf32>
    %21 = arith.subf %20, %19 : vector<4x1xf32>
    %22 = math.exp %21 : vector<4x1xf32>
    %cst_13 = arith.constant 1.000000e+00 : f32
    %23 = vector.broadcast %cst_13 : f32 to vector<4x1xf32>
    %24 = arith.addf %23, %22 : vector<4x1xf32>
    %cst_14 = arith.constant 1.000000e+00 : f32
    %25 = vector.broadcast %cst_14 : f32 to vector<4x1xf32>
    %26 = arith.divf %25, %24 : vector<4x1xf32>
    %c0_15 = arith.constant 0 : index
    %c0_16 = arith.constant 0 : index
    %27 = vector.load %arg6[%c0_15, %c0_16] : memref<4x1xf32, #tpu.memory_space<vmem>>, vector<4x1xf32>
    tpu.vector_store %arg6[%c0_15, %c0_16], %26 {strides = array<i32>} : memref<4x1xf32, #tpu.memory_space<vmem>>, vector<4x1xf32>,
    return
  }
  func.func @transform_0(%arg0: i32) -> (i32, i32) {
    %c0_i32 = arith.constant 0 : i32
    %c0_i32_0 = arith.constant 0 : i32
    return %arg0, %c0_i32 : i32, i32
  }
  func.func @transform_1(%arg0: i32) -> (i32, i32) {
    %c0_i32 = arith.constant 0 : i32
    %c0_i32_0 = arith.constant 0 : i32
    %c0_i32_1 = arith.constant 0 : i32
    return %c0_i32, %c0_i32_0 : i32, i32
  }
  func.func @transform_2(%arg0: i32) -> (i32, i32) {
    %c0_i32 = arith.constant 0 : i32
    %c0_i32_0 = arith.constant 0 : i32
    %c0_i32_1 = arith.constant 0 : i32
    return %c0_i32, %c0_i32_0 : i32, i32
  }
  func.func @transform_3(%arg0: i32) -> (i32, i32) {
    %c0_i32 = arith.constant 0 : i32
    %c0_i32_0 = arith.constant 0 : i32
    %c0_i32_1 = arith.constant 0 : i32
    return %c0_i32, %c0_i32_0 : i32, i32
  }
  func.func @transform_4(%arg0: i32) -> (i32, i32) {
    %c0_i32 = arith.constant 0 : i32
    %c0_i32_0 = arith.constant 0 : i32
    %c0_i32_1 = arith.constant 0 : i32
    return %c0_i32, %c0_i32_0 : i32, i32
  }
  func.func @transform_5(%arg0: i32) -> (i32, i32) {
    %c0_i32 = arith.constant 0 : i32
    %c0_i32_0 = arith.constant 0 : i32
    return %arg0, %c0_i32 : i32, i32
  }
}

</mosaic_0001>

<bundles_post_ra>
// kernel: tpu_custom_call.1
= control target key start
LH: loop header
LB: loop body
LE: loop exit
PB: predicated region body
PF: predicated region fallthrough
CT: control target
= control target key end

     0   :  { %s5432_s0 = inlined_call_operand.hbm [shape: f32[4,2000], index: 0, kind: input, shape index: {}]   ;;  %s5433_s1 = inlined_call_operand.hbm [shape: bf16[2000,512], index: 1, kind: input, shape index: {}]   ;;  %s5434_s2 = inlined_call_operand.hbm [shape: f32[1,512], index: 2, kind: input, shape index: {}]   ;;  %s5435_s3 = inlined_call_operand.hbm [shape: f32[1,512], index: 3, kind: input, shape index: {}]   ;;  %s5436_s4 = inlined_call_operand.<no memory space> [shape: f32[1,1], index: 4, kind: input, shape index: {}]   ;;  %s5437_s5 = inlined_call_operand.vmem [shape: f32[4,1], index: 5, kind: output, shape index: {}]  }
   0x1   :  { %v10_v0 = vstv %s5436_s4 }
   0x2   :  { %11 = vst [vmem:[#allocation2] sm:$0x1] %v10_v0 }
   0x3   :  { %12 = vsyncpa [#allocation4], 0 }
   0x4   :  { %13 = vsyncpa [#allocation6], 0 }
   0x5   :  { %14 = vsyncpa [#allocation9], 0  ;;  %s5231_s20 = smov [#allocation5]  }
   0x6   :  { %s30_s21 = sshll.u32 %s5231_s20, 4  ;;  %s31_s21 = int_to_ptr.vmem [resolvable:$true] %s30_s21 }
   0x7   :  { %s5153_s22 = scalar_lea.vmem %s31_s21, 64000  ;;  %p5158_p1 = scmp.lt.s32.totalorder %s31_s21, %s31_s21 }
   0x8   :  { %p5154_p0 = scmp.ne.s32.totalorder %s31_s21, %s5153_s22  ;;  %p5159_p2 = scmp.lt.s32.totalorder %s5153_s22, %s5153_s22 }
   0xa   :  { %p5160_p3 = por %p5159_p2, %p5158_p1 }
   0xc   :  { %p5161_p4 = pnand %p5160_p3, %p5154_p0 }
   0xe   :  { %5164 = shalt.err (!%p5161_p4)
}
   0xf   :  { %s5232_s23 = smov 256   ;;  %s5233_s24 = smov 16  }
  0x10   :  { %36 = dma.hbm_to_vmem [thread:$0]  %s5433_s1, 64000, %s31_s21, [#allocation6], %s5232_s23, %s5232_s23, %s5233_s24  }
  0x11   :  { %s5234_s4 = smov [#allocation3]   ;;  %s5235_s28 = smov [#allocation7]  }
  0x12   :  { %s21_s27 = sshll.u32 %s5234_s4, 4  ;;  %s43_s29 = sshll.u32 %s5235_s28, 4  ;;  %s22_s27 = int_to_ptr.vmem [resolvable:$true] %s21_s27  ;;  %s44_s29 = int_to_ptr.vmem [resolvable:$true] %s43_s29 }
  0x13   :  { %s5173_s30 = scalar_lea.vmem %s22_s27, 1024  ;;  %p5178_p6 = scmp.lt.s32.totalorder %s22_s27, %s22_s27 }
  0x14   :  { %p5174_p5 = scmp.ne.s32.totalorder %s22_s27, %s5173_s30  ;;  %p5179_p7 = scmp.lt.s32.totalorder %s5173_s30, %s5173_s30 }
  0x16   :  { %p5180_p8 = por %p5179_p7, %p5178_p6 }
  0x18   :  { %p5181_p9 = pnand %p5180_p8, %p5174_p5 }
  0x1a   :  { %5184 = shalt.err (!%p5181_p9)
}
  0x1b   :  { %24 = dma.hbm_to_vmem [thread:$0]  %s5432_s0, 1024, %s22_s27, [#allocation4]  }
  0x1c   :  { %s5193_s8 = scalar_lea.vmem %s44_s29, 64  ;;  %p5198_p11 = scmp.lt.s32.totalorder %s44_s29, %s44_s29 }
  0x1d   :  { %p5194_p10 = scmp.ne.s32.totalorder %s44_s29, %s5193_s8  ;;  %p5199_p12 = scmp.lt.s32.totalorder %s5193_s8, %s5193_s8 }
  0x1f   :  { %p5200_p13 = por %p5199_p12, %p5198_p11 }
  0x21   :  { %p5201_p0 = pnand %p5200_p13, %p5194_p10 }
  0x23   :  { %5204 = shalt.err (!%p5201_p0)
}
  0x24   :  { %46 = dma.hbm_to_vmem [thread:$0]  %s5434_s2, 64, %s44_s29, [#allocation6]  }
  0x25   :  { %s5236_s10 = smov [#allocation8]  }
  0x26   :  { %s53_s11 = sshll.u32 %s5236_s10, 4  ;;  %s54_s11 = int_to_ptr.vmem [resolvable:$true] %s53_s11 }
  0x27   :  { %s5213_s12 = scalar_lea.vmem %s54_s11, 64  ;;  %p5218_p2 = scmp.lt.s32.totalorder %s54_s11, %s54_s11 }
  0x28   :  { %p5214_p1 = scmp.ne.s32.totalorder %s54_s11, %s5213_s12  ;;  %p5219_p3 = scmp.lt.s32.totalorder %s5213_s12, %s5213_s12 }
  0x2a   :  { %p5220_p4 = por %p5219_p3, %p5218_p2 }
  0x2c   :  { %p5221_p5 = pnand %p5220_p4, %p5214_p1 }
  0x2e   :  { %5224 = shalt.err (!%p5221_p5)
}
  0x2f   :  { %56 = dma.hbm_to_vmem [thread:$0]  %s5435_s3, 64, %s54_s11, [#allocation9]  }
  0x30   :  { %5225 = dma.done.wait [#allocation4], 1024  }
  0x31   :  { %5226 = vsyncadd [#allocation4], 4294966272 }
  0x32   :  { %5227 = dma.done.wait [#allocation6], 64064  }
  0x33   :  { %5228 = vsyncadd [#allocation6], 4294903232 }
  0x34   :  { %5229 = dma.done.wait [#allocation9], 64  }
  0x35   :  { %5230 = vsyncadd [#allocation9], 4294967232  ;;  %v4382_v1 = vld [vmem:[#allocation5 + $0xe4] ss:$16 sps:$4 sm:$0xff]   ;;  %v4386_v3 = vld [vmem:[#allocation5 + $0xe0] ss:$16 sps:$4 sm:$0xff]  }
  0x36   :  { %v4384_v2 = vld [vmem:[#allocation5 + $0x2e4] ss:$16 sps:$4 sm:$0xff]   ;;  %3146 = vmatprep.subr.bf16.mxu0 %v4382_v1  ;;  %v4387_v4 = vld [vmem:[#allocation5 + $0x2e0] ss:$16 sps:$4 sm:$0xff]   ;;  %v73_v49 = vld [vmem:[#allocation3 + $0x8] sm:$0xff]  ;;  %vm3142_vm0 = vcmask 654336  }
  0x37   :  { %3187 = vmatprep.subr.bf16.mxu1 %v4384_v2  ;;  %v4388_v5 = vld [vmem:[#allocation5 + $0xc4] ss:$16 sps:$4 sm:$0xff]   ;;  %3147 = vmatpush1.bf16.msra.mxu0 %v4386_v3  ;;  %v4392_v7 = vld [vmem:[#allocation5 + $0xc0] ss:$16 sps:$4 sm:$0xff]   ;;  %v89_v52 = vcombine.high %v73_v49, %v73_v49  ;;  %vm3840_vm3 = vcmask 1043456   ;;  %vm3864_vm6 = vcmask 3072  }
  0x38   :  { %3188 = vmatpush1.bf16.msra.mxu1 %v4387_v4  ;;  %v4390_v6 = vld [vmem:[#allocation5 + $0x2c4] ss:$16 sps:$4 sm:$0xff]   ;;  %3148 = vmatprep.subr.bf16.mxu0 %v4388_v5  ;;  %v4393_v8 = vld [vmem:[#allocation5 + $0x2c0] ss:$16 sps:$4 sm:$0xff]  }
  0x39   :  { %3189 = vmatprep.subr.bf16.mxu1 %v4390_v6  ;;  %v4394_v9 = vld [vmem:[#allocation5 + $0xa4] ss:$16 sps:$4 sm:$0xff]   ;;  %v4398_v11 = vld [vmem:[#allocation5 + $0xa0] ss:$16 sps:$4 sm:$0xff]   ;;  %v5284_v56 = vpack.c.bf16 %v89_v52, %v89_v52 }
  0x3a   :  { %v4396_v10 = vld [vmem:[#allocation5 + $0x2a4] ss:$16 sps:$4 sm:$0xff]   ;;  %v4399_v12 = vld [vmem:[#allocation5 + $0x2a0] ss:$16 sps:$4 sm:$0xff]  }
  0x3b   :  { %3149 = vmatpush1.bf16.msra.mxu0 %v4392_v7  ;;  %v4400_v13 = vld [vmem:[#allocation5 + $0x84] ss:$16 sps:$4 sm:$0xff]   ;;  %v4404_v15 = vld [vmem:[#allocation5 + $0x80] ss:$16 sps:$4 sm:$0xff]   ;;  %3219 = vmatprep.mubr.bf16.mxu1 %v5284_v56 }
  0x3c   :  { %3190 = vmatpush1.bf16.msra.mxu1 %v4393_v8  ;;  %3150 = vmatprep.subr.bf16.mxu0 %v4394_v9  ;;  %v4402_v14 = vld [vmem:[#allocation5 + $0x284] ss:$16 sps:$4 sm:$0xff]   ;;  %v4405_v16 = vld [vmem:[#allocation5 + $0x280] ss:$16 sps:$4 sm:$0xff]  }
  0x3d   :  { %3191 = vmatprep.subr.bf16.mxu1 %v4396_v10  ;;  %v4406_v17 = vld [vmem:[#allocation5 + $0x64] ss:$16 sps:$4 sm:$0xff]   ;;  %v4410_v19 = vld [vmem:[#allocation5 + $0x60] ss:$16 sps:$4 sm:$0xff]   ;;  %v5290_v10 = vpack.c.bf16 %v73_v49, %v73_v49 }
  0x3e   :  { %v4408_v18 = vld [vmem:[#allocation5 + $0x264] ss:$16 sps:$4 sm:$0xff]   ;;  %v4411_v20 = vld [vmem:[#allocation5 + $0x260] ss:$16 sps:$4 sm:$0xff]  }
  0x3f   :  { %3151 = vmatpush1.bf16.msra.mxu0 %v4398_v11  ;;  %v4412_v21 = vld [vmem:[#allocation5 + $0x44] ss:$16 sps:$4 sm:$0xff]   ;;  %v4416_v23 = vld [vmem:[#allocation5 + $0x40] ss:$16 sps:$4 sm:$0xff]  }
  0x40   :  { %3192 = vmatpush1.bf16.msra.mxu1 %v4399_v12  ;;  %3152 = vmatprep.subr.bf16.mxu0 %v4400_v13  ;;  %v4414_v22 = vld [vmem:[#allocation5 + $0x244] ss:$16 sps:$4 sm:$0xff]   ;;  %v4417_v24 = vld [vmem:[#allocation5 + $0x240] ss:$16 sps:$4 sm:$0xff]  }
  0x41   :  { %3193 = vmatprep.subr.bf16.mxu1 %v4402_v14  ;;  %v4418_v25 = vld [vmem:[#allocation5 + $0x24] ss:$16 sps:$4 sm:$0xff]   ;;  %v4422_v27 = vld [vmem:[#allocation5 + $0x20] ss:$16 sps:$4 sm:$0xff]  }
  0x42   :  { %v4420_v26 = vld [vmem:[#allocation5 + $0x224] ss:$16 sps:$4 sm:$0xff]   ;;  %v4423_v28 = vld [vmem:[#allocation5 + $0x220] ss:$16 sps:$4 sm:$0xff]  }
  0x43   :  { %3153 = vmatpush1.bf16.msra.mxu0 %v4404_v15  ;;  %v4424_v29 = vld [vmem:[#allocation5 + $0x4] ss:$16 sps:$4 sm:$0xff]   ;;  %v4428_v31 = vld [vmem:[#allocation5] ss:$16 sps:$4 sm:$0xff]  }
  0x44   :  { %3194 = vmatpush1.bf16.msra.mxu1 %v4405_v16  ;;  %3154 = vmatprep.subr.bf16.mxu0 %v4406_v17  ;;  %v4426_v30 = vld [vmem:[#allocation5 + $0x204] ss:$16 sps:$4 sm:$0xff]   ;;  %v4429_v32 = vld [vmem:[#allocation5 + $0x200] ss:$16 sps:$4 sm:$0xff]  }
  0x45   :  { %3195 = vmatprep.subr.bf16.mxu1 %v4408_v18  ;;  %v4430_v33 = vld [vmem:[#allocation5 + $0x1e4] ss:$16 sps:$4 sm:$0xff]   ;;  %v4434_v35 = vld [vmem:[#allocation5 + $0x1e0] ss:$16 sps:$4 sm:$0xff]  }
  0x46   :  { %v4432_v34 = vld [vmem:[#allocation5 + $0x3e4] ss:$16 sps:$4 sm:$0xff]   ;;  %v4435_v36 = vld [vmem:[#allocation5 + $0x3e0] ss:$16 sps:$4 sm:$0xff]  }
  0x47   :  { %3155 = vmatpush1.bf16.msra.mxu0 %v4410_v19  ;;  %v4436_v37 = vld [vmem:[#allocation5 + $0x1c4] ss:$16 sps:$4 sm:$0xff]   ;;  %v4440_v39 = vld [vmem:[#allocation5 + $0x1c0] ss:$16 sps:$4 sm:$0xff]  }
  0x48   :  { %3196 = vmatpush1.bf16.msra.mxu1 %v4411_v20  ;;  %3156 = vmatprep.subr.bf16.mxu0 %v4412_v21  ;;  %v4438_v38 = vld [vmem:[#allocation5 + $0x3c4] ss:$16 sps:$4 sm:$0xff]   ;;  %v4441_v40 = vld [vmem:[#allocation5 + $0x3c0] ss:$16 sps:$4 sm:$0xff]  }
  0x49   :  { %3197 = vmatprep.subr.bf16.mxu1 %v4414_v22  ;;  %v4442_v41 = vld [vmem:[#allocation5 + $0x1a4] ss:$16 sps:$4 sm:$0xff]   ;;  %v4446_v43 = vld [vmem:[#allocation5 + $0x1a0] ss:$16 sps:$4 sm:$0xff]  }
  0x4a   :  { %v4444_v42 = vld [vmem:[#allocation5 + $0x3a4] ss:$16 sps:$4 sm:$0xff]   ;;  %v4447_v44 = vld [vmem:[#allocation5 + $0x3a0] ss:$16 sps:$4 sm:$0xff]  }
  0x4b   :  { %3157 = vmatpush1.bf16.msra.mxu0 %v4416_v23  ;;  %v4448_v45 = vld [vmem:[#allocation5 + $0x184] ss:$16 sps:$4 sm:$0xff]   ;;  %v4452_v50 = vld [vmem:[#allocation5 + $0x180] ss:$16 sps:$4 sm:$0xff]  }
  0x4c   :  { %3198 = vmatpush1.bf16.msra.mxu1 %v4417_v24  ;;  %3158 = vmatprep.subr.bf16.mxu0 %v4418_v25  ;;  %v4450_v46 = vld [vmem:[#allocation5 + $0x384] ss:$16 sps:$4 sm:$0xff]   ;;  %v4453_v51 = vld [vmem:[#allocation5 + $0x380] ss:$16 sps:$4 sm:$0xff]  }
  0x4d   :  { %3199 = vmatprep.subr.bf16.mxu1 %v4420_v26  ;;  %v72_v47 = vld [vmem:[#allocation3] sm:$0xff] }
  0x4e   :  { %v88_v48 = vcombine.high %v72_v47, %v72_v47  ;;  %v4454_v53 = vld [vmem:[#allocation5 + $0x164] ss:$16 sps:$4 sm:$0xff]   ;;  %v4458_v57 = vld [vmem:[#allocation5 + $0x160] ss:$16 sps:$4 sm:$0xff]   ;;  %v5288_v9 = vpack.c.bf16 %v72_v47, %v72_v47 }
  0x4f   :  { %3159 = vmatpush1.bf16.msra.mxu0 %v4422_v27  ;;  %v4456_v54 = vld [vmem:[#allocation5 + $0x364] ss:$16 sps:$4 sm:$0xff]   ;;  %v4459_v58 = vld [vmem:[#allocation5 + $0x360] ss:$16 sps:$4 sm:$0xff]  }
  0x50   :  { %3200 = vmatpush1.bf16.msra.mxu1 %v4423_v28  ;;  %3160 = vmatprep.subr.bf16.mxu0 %v4424_v29  ;;  %v5282_v55 = vpack.c.bf16 %v88_v48, %v88_v48  ;;  %v4460_v59 = vld [vmem:[#allocation5 + $0x144] ss:$16 sps:$4 sm:$0xff]   ;;  %v4464_v61 = vld [vmem:[#allocation5 + $0x140] ss:$16 sps:$4 sm:$0xff]  }
  0x51   :  { %3201 = vmatprep.subr.bf16.mxu1 %v4426_v30  ;;  %v4462_v60 = vld [vmem:[#allocation5 + $0x344] ss:$16 sps:$4 sm:$0xff]   ;;  %v4465_v62 = vld [vmem:[#allocation5 + $0x340] ss:$16 sps:$4 sm:$0xff]  }
  0x52   :  { %3178 = vmatprep.mubr.bf16.mxu0 %v5282_v55  ;;  %v4466_v63 = vld [vmem:[#allocation5 + $0x124] ss:$16 sps:$4 sm:$0xff]   ;;  %v4470_v1 = vld [vmem:[#allocation5 + $0x120] ss:$16 sps:$4 sm:$0xff]  }
  0x53   :  { %3161 = vmatpush1.bf16.msra.mxu0 %v4428_v31  ;;  %v4468_v0 = vld [vmem:[#allocation5 + $0x324] ss:$16 sps:$4 sm:$0xff]   ;;  %v4471_v2 = vld [vmem:[#allocation5 + $0x320] ss:$16 sps:$4 sm:$0xff]  }
  0x54   :  { %3202 = vmatpush1.bf16.msra.mxu1 %v4429_v32  ;;  %3162 = vmatprep.subr.bf16.mxu0 %v4430_v33  ;;  %v4472_v3 = vld [vmem:[#allocation5 + $0x104] ss:$16 sps:$4 sm:$0xff]   ;;  %v4476_v5 = vld [vmem:[#allocation5 + $0x100] ss:$16 sps:$4 sm:$0xff]  }
  0x55   :  { %3203 = vmatprep.subr.bf16.mxu1 %v4432_v34  ;;  %v4474_v4 = vld [vmem:[#allocation5 + $0x304] ss:$16 sps:$4 sm:$0xff]   ;;  %v4477_v6 = vld [vmem:[#allocation5 + $0x300] ss:$16 sps:$4 sm:$0xff]  }
  0x56   :  { %v4482_v7 = vld [vmem:[#allocation5 + $0x4e4] ss:$16 sps:$4 sm:$0xff]   ;;  %v4480_v11 = vld [vmem:[#allocation5 + $0x4e0] ss:$16 sps:$4 sm:$0xff]  }
  0x57   :  { %3163 = vmatpush2.bf16.msra.mxu0 %v4434_v35  ;;  %v4485_v8 = vld [vmem:[#allocation5 + $0x6e4] ss:$16 sps:$4 sm:$0xff]   ;;  %v4483_v12 = vld [vmem:[#allocation5 + $0x6e0] ss:$16 sps:$4 sm:$0xff]  }
  0x58   :  { %3204 = vmatpush2.bf16.msra.mxu1 %v4435_v36  ;;  %3164 = vmatprep.subr.bf16.mxu0 %v4436_v37  ;;  %v4488_v13 = vld [vmem:[#allocation5 + $0x4c4] ss:$16 sps:$4 sm:$0xff]   ;;  %v4486_v15 = vld [vmem:[#allocation5 + $0x4c0] ss:$16 sps:$4 sm:$0xff]   ;;  %v5296_v36 = vld [vmem:[#allocation3 + $0x18] sm:$0xff] }
  0x59   :  { %3205 = vmatprep.subr.bf16.mxu1 %v4438_v38  ;;  %v4491_v14 = vld [vmem:[#allocation5 + $0x6c4] ss:$16 sps:$4 sm:$0xff]   ;;  %v4489_v16 = vld [vmem:[#allocation5 + $0x6c0] ss:$16 sps:$4 sm:$0xff]  }
  0x5a   :  { %v4494_v17 = vld [vmem:[#allocation5 + $0x4a4] ss:$16 sps:$4 sm:$0xff]   ;;  %v4492_v19 = vld [vmem:[#allocation5 + $0x4a0] ss:$16 sps:$4 sm:$0xff]  }
  0x5b   :  { %3165 = vmatpush2.bf16.msra.mxu0 %v4440_v39  ;;  %v4497_v18 = vld [vmem:[#allocation5 + $0x6a4] ss:$16 sps:$4 sm:$0xff]   ;;  %v4495_v20 = vld [vmem:[#allocation5 + $0x6a0] ss:$16 sps:$4 sm:$0xff]  }
  0x5c   :  { %3206 = vmatpush2.bf16.msra.mxu1 %v4441_v40  ;;  %3166 = vmatprep.subr.bf16.mxu0 %v4442_v41  ;;  %v4500_v21 = vld [vmem:[#allocation5 + $0x484] ss:$16 sps:$4 sm:$0xff]   ;;  %v4498_v23 = vld [vmem:[#allocation5 + $0x480] ss:$16 sps:$4 sm:$0xff]   ;;  %v91_v40 = vcombine.high %v5296_v36, %v5296_v36 }
  0x5d   :  { %3207 = vmatprep.subr.bf16.mxu1 %v4444_v42  ;;  %v4503_v22 = vld [vmem:[#allocation5 + $0x684] ss:$16 sps:$4 sm:$0xff]   ;;  %v4501_v24 = vld [vmem:[#allocation5 + $0x680] ss:$16 sps:$4 sm:$0xff]  }
  0x5e   :  { %v4506_v25 = vld [vmem:[#allocation5 + $0x464] ss:$16 sps:$4 sm:$0xff]   ;;  %v4504_v27 = vld [vmem:[#allocation5 + $0x460] ss:$16 sps:$4 sm:$0xff]  }
  0x5f   :  { %3167 = vmatpush2.bf16.msra.mxu0 %v4446_v43  ;;  %v4509_v26 = vld [vmem:[#allocation5 + $0x664] ss:$16 sps:$4 sm:$0xff]   ;;  %v4507_v28 = vld [vmem:[#allocation5 + $0x660] ss:$16 sps:$4 sm:$0xff]  }
  0x60   :  { %3208 = vmatpush2.bf16.msra.mxu1 %v4447_v44  ;;  %3168 = vmatprep.subr.bf16.mxu0 %v4448_v45  ;;  %v4512_v29 = vld [vmem:[#allocation5 + $0x444] ss:$16 sps:$4 sm:$0xff]   ;;  %v4510_v31 = vld [vmem:[#allocation5 + $0x440] ss:$16 sps:$4 sm:$0xff]   ;;  %v5304_v44 = vpack.c.bf16 %v91_v40, %v91_v40 }
  0x61   :  { %3209 = vmatprep.subr.bf16.mxu1 %v4450_v46  ;;  %v4515_v30 = vld [vmem:[#allocation5 + $0x644] ss:$16 sps:$4 sm:$0xff]   ;;  %v4513_v32 = vld [vmem:[#allocation5 + $0x640] ss:$16 sps:$4 sm:$0xff]  }
  0x62   :  { %v4518_v33 = vld [vmem:[#allocation5 + $0x424] ss:$16 sps:$4 sm:$0xff]   ;;  %v4516_v37 = vld [vmem:[#allocation5 + $0x420] ss:$16 sps:$4 sm:$0xff]  }
  0x63   :  { %3169 = vmatpush2.bf16.msra.mxu0 %v4452_v50  ;;  %v4521_v34 = vld [vmem:[#allocation5 + $0x624] ss:$16 sps:$4 sm:$0xff]   ;;  %v4519_v38 = vld [vmem:[#allocation5 + $0x620] ss:$16 sps:$4 sm:$0xff]  }
  0x64   :  { %3210 = vmatpush2.bf16.msra.mxu1 %v4453_v51  ;;  %3170 = vmatprep.subr.bf16.mxu0 %v4454_v53  ;;  %v5294_v35 = vld [vmem:[#allocation3 + $0x10] sm:$0xff] }
  0x65   :  { %3211 = vmatprep.subr.bf16.mxu1 %v4456_v54  ;;  %v90_v39 = vcombine.high %v5294_v35, %v5294_v35  ;;  %v4524_v41 = vld [vmem:[#allocation5 + $0x404] ss:$16 sps:$4 sm:$0xff]   ;;  %v4522_v45 = vld [vmem:[#allocation5 + $0x400] ss:$16 sps:$4 sm:$0xff]  }
  0x66   :  { %v4527_v42 = vld [vmem:[#allocation5 + $0x604] ss:$16 sps:$4 sm:$0xff]   ;;  %v4525_v46 = vld [vmem:[#allocation5 + $0x600] ss:$16 sps:$4 sm:$0xff]  }
  0x67   :  { %3171 = vmatpush2.bf16.msra.mxu0 %v4458_v57  ;;  %v5302_v43 = vpack.c.bf16 %v90_v39, %v90_v39  ;;  %v4530_v47 = vld [vmem:[#allocation5 + $0x5e4] ss:$16 sps:$4 sm:$0xff]   ;;  %v4528_v49 = vld [vmem:[#allocation5 + $0x5e0] ss:$16 sps:$4 sm:$0xff]  }
  0x68   :  { %3212 = vmatpush2.bf16.msra.mxu1 %v4459_v58  ;;  %3172 = vmatprep.subr.bf16.mxu0 %v4460_v59  ;;  %v4533_v48 = vld [vmem:[#allocation5 + $0x7e4] ss:$16 sps:$4 sm:$0xff]   ;;  %v4531_v50 = vld [vmem:[#allocation5 + $0x7e0] ss:$16 sps:$4 sm:$0xff]  }
  0x69   :  { %3213 = vmatprep.subr.bf16.mxu1 %v4462_v60  ;;  %v4536_v51 = vld [vmem:[#allocation5 + $0x5c4] ss:$16 sps:$4 sm:$0xff]   ;;  %v4534_v53 = vld [vmem:[#allocation5 + $0x5c0] ss:$16 sps:$4 sm:$0xff]  }
  0x6a   :  { %v4539_v52 = vld [vmem:[#allocation5 + $0x7c4] ss:$16 sps:$4 sm:$0xff]   ;;  %v4537_v54 = vld [vmem:[#allocation5 + $0x7c0] ss:$16 sps:$4 sm:$0xff]  }
  0x6b   :  { %3173 = vmatpush2.bf16.msra.mxu0 %v4464_v61  ;;  %v4542_v57 = vld [vmem:[#allocation5 + $0x5a4] ss:$16 sps:$4 sm:$0xff]   ;;  %v4540_v59 = vld [vmem:[#allocation5 + $0x5a0] ss:$16 sps:$4 sm:$0xff]  }
  0x6c   :  { %3214 = vmatpush2.bf16.msra.mxu1 %v4465_v62  ;;  %3174 = vmatprep.subr.bf16.mxu0 %v4466_v63  ;;  %v4545_v58 = vld [vmem:[#allocation5 + $0x7a4] ss:$16 sps:$4 sm:$0xff]   ;;  %v4543_v60 = vld [vmem:[#allocation5 + $0x7a0] ss:$16 sps:$4 sm:$0xff]  }
  0x6d   :  { %3215 = vmatprep.subr.bf16.mxu1 %v4468_v0  ;;  %v4548_v61 = vld [vmem:[#allocation5 + $0x584] ss:$16 sps:$4 sm:$0xff]   ;;  %v4546_v63 = vld [vmem:[#allocation5 + $0x580] ss:$16 sps:$4 sm:$0xff]  }
  0x6e   :  { %v4551_v62 = vld [vmem:[#allocation5 + $0x784] ss:$16 sps:$4 sm:$0xff]   ;;  %v4549_v0 = vld [vmem:[#allocation5 + $0x780] ss:$16 sps:$4 sm:$0xff]  }
  0x6f   :  { %3175 = vmatpush2.bf16.msra.mxu0 %v4470_v1  ;;  %v4554_v1 = vld [vmem:[#allocation5 + $0x564] ss:$16 sps:$4 sm:$0xff]  }
  0x70   :  { %3216 = vmatpush2.bf16.msra.mxu1 %v4471_v2  ;;  %3176 = vmatprep.subr.bf16.mxu0 %v4472_v3  ;;  %v4557_v2 = vld [vmem:[#allocation5 + $0x764] ss:$16 sps:$4 sm:$0xff]   ;;  %v4552_v3 = vld [vmem:[#allocation5 + $0x560] ss:$16 sps:$4 sm:$0xff]  }
  0x71   :  { %3217 = vmatprep.subr.bf16.mxu1 %v4474_v4  ;;  %v4555_v4 = vld [vmem:[#allocation5 + $0x760] ss:$16 sps:$4 sm:$0xff]   ;;  %v4598_v39 = vld [vmem:[#allocation5 + $0x884] ss:$16 sps:$4 sm:$0xff]  }
  0x72   :  { %v4601_v40 = vld [vmem:[#allocation5 + $0xa84] ss:$16 sps:$4 sm:$0xff]  }
  0x73   :  { %3177 = vmatpush2.bf16.msra.mxu0 %v4476_v5  ;;  %v4560_v5 = vld [vmem:[#allocation5 + $0x544] ss:$16 sps:$4 sm:$0xff]  }
  0x74   :  { %3218 = vmatpush2.bf16.msra.mxu1 %v4477_v6  ;;  %3228 = vmatprep.subr.bf16.mxu0 %v4482_v7  ;;  %v4563_v6 = vld [vmem:[#allocation5 + $0x744] ss:$16 sps:$4 sm:$0xff]   ;;  %v4558_v7 = vld [vmem:[#allocation5 + $0x540] ss:$16 sps:$4 sm:$0xff]  }
  0x75   :  { %3269 = vmatprep.subr.bf16.mxu1 %v4485_v8  ;;  %v4561_v8 = vld [vmem:[#allocation5 + $0x740] ss:$16 sps:$4 sm:$0xff]  }
  0x76   :  { %3179 = vmatmul.mubr.bf16.vlgmr.msra.gmra.mxu0 %v5288_v9 }
  0x77   :  { %3220 = vmatmul.mubr.bf16.vlgmr.msra.gmra.mxu1 %v5290_v10  ;;  %3229 = vmatpush1.bf16.msra.mxu0 %v4480_v11  ;;  %v4566_v11 = vld [vmem:[#allocation5 + $0x524] ss:$16 sps:$4 sm:$0xff]  }
  0x78   :  { %3270 = vmatpush1.bf16.msra.mxu1 %v4483_v12  ;;  %3230 = vmatprep.subr.bf16.mxu0 %v4488_v13  ;;  %v4569_v12 = vld [vmem:[#allocation5 + $0x724] ss:$16 sps:$4 sm:$0xff]   ;;  %v4564_v13 = vld [vmem:[#allocation5 + $0x520] ss:$16 sps:$4 sm:$0xff]  }
  0x79   :  { %3271 = vmatprep.subr.bf16.mxu1 %v4491_v14  ;;  %3260 = vmatprep.mubr.bf16.mxu0 %v5302_v43  ;;  %v4567_v14 = vld [vmem:[#allocation5 + $0x720] ss:$16 sps:$4 sm:$0xff]  }
  0x7a   :  { %3301 = vmatprep.mubr.bf16.mxu1 %v5304_v44 }
  0x7b   :  { %3231 = vmatpush1.bf16.msra.mxu0 %v4486_v15  ;;  %v4572_v15 = vld [vmem:[#allocation5 + $0x504] ss:$16 sps:$4 sm:$0xff]  }
  0x7c   :  { %3272 = vmatpush1.bf16.msra.mxu1 %v4489_v16  ;;  %3232 = vmatprep.subr.bf16.mxu0 %v4494_v17  ;;  %v4575_v16 = vld [vmem:[#allocation5 + $0x704] ss:$16 sps:$4 sm:$0xff]   ;;  %v4570_v17 = vld [vmem:[#allocation5 + $0x500] ss:$16 sps:$4 sm:$0xff]  }
  0x7d   :  { %3273 = vmatprep.subr.bf16.mxu1 %v4497_v18  ;;  %v4573_v18 = vld [vmem:[#allocation5 + $0x700] ss:$16 sps:$4 sm:$0xff]  }
  0x7f   :  { %3233 = vmatpush1.bf16.msra.mxu0 %v4492_v19  ;;  %v4580_v19 = vld [vmem:[#allocation5 + $0x8e4] ss:$16 sps:$4 sm:$0xff]  }
  0x80   :  { %3274 = vmatpush1.bf16.msra.mxu1 %v4495_v20  ;;  %3234 = vmatprep.subr.bf16.mxu0 %v4500_v21  ;;  %v4583_v20 = vld [vmem:[#allocation5 + $0xae4] ss:$16 sps:$4 sm:$0xff]   ;;  %v5310_v21 = vpack.c.bf16 %v5294_v35, %v5294_v35 }
  0x81   :  { %3275 = vmatprep.subr.bf16.mxu1 %v4503_v22  ;;  %v5314_v22 = vpack.c.bf16 %v5296_v36, %v5296_v36  ;;  %v4592_v35 = vld [vmem:[#allocation5 + $0x8a4] ss:$16 sps:$4 sm:$0xff]  }
  0x82   :  { %v4595_v36 = vld [vmem:[#allocation5 + $0xaa4] ss:$16 sps:$4 sm:$0xff]  }
  0x83   :  { %3235 = vmatpush1.bf16.msra.mxu0 %v4498_v23  ;;  %v4578_v23 = vld [vmem:[#allocation5 + $0x8e0] ss:$16 sps:$4 sm:$0xff]  }
  0x84   :  { %3276 = vmatpush1.bf16.msra.mxu1 %v4501_v24  ;;  %3236 = vmatprep.subr.bf16.mxu0 %v4506_v25  ;;  %v4581_v24 = vld [vmem:[#allocation5 + $0xae0] ss:$16 sps:$4 sm:$0xff]   ;;  %v4586_v25 = vld [vmem:[#allocation5 + $0x8c4] ss:$16 sps:$4 sm:$0xff]  }
  0x85   :  { %3277 = vmatprep.subr.bf16.mxu1 %v4509_v26  ;;  %v4589_v26 = vld [vmem:[#allocation5 + $0xac4] ss:$16 sps:$4 sm:$0xff]  }
  0x87   :  { %3237 = vmatpush1.bf16.msra.mxu0 %v4504_v27  ;;  %v5316_v27 = vld [vmem:[#allocation3 + $0x20] sm:$0xff] }
  0x88   :  { %3278 = vmatpush1.bf16.msra.mxu1 %v4507_v28  ;;  %3238 = vmatprep.subr.bf16.mxu0 %v4512_v29  ;;  %v5318_v28 = vld [vmem:[#allocation3 + $0x28] sm:$0xff]  ;;  %v92_v29 = vcombine.high %v5316_v27, %v5316_v27 }
  0x89   :  { %3279 = vmatprep.subr.bf16.mxu1 %v4515_v30  ;;  %v93_v30 = vcombine.high %v5318_v28, %v5318_v28 }
  0x8b   :  { %3239 = vmatpush1.bf16.msra.mxu0 %v4510_v31  ;;  %v4584_v31 = vld [vmem:[#allocation5 + $0x8c0] ss:$16 sps:$4 sm:$0xff]  }
  0x8c   :  { %3280 = vmatpush1.bf16.msra.mxu1 %v4513_v32  ;;  %3240 = vmatprep.subr.bf16.mxu0 %v4518_v33  ;;  %v4587_v32 = vld [vmem:[#allocation5 + $0xac0] ss:$16 sps:$4 sm:$0xff]   ;;  %v5326_v33 = vpack.c.bf16 %v92_v29, %v92_v29  ;;  %v4664_v29 = vld [vmem:[#allocation5 + $0x924] ss:$16 sps:$4 sm:$0xff]  }
  0x8d   :  { %3281 = vmatprep.subr.bf16.mxu1 %v4521_v34  ;;  %v5328_v34 = vpack.c.bf16 %v93_v30, %v93_v30  ;;  %v4667_v30 = vld [vmem:[#allocation5 + $0xb24] ss:$16 sps:$4 sm:$0xff]  }
  0x8f   :  { %3241 = vmatpush1.bf16.msra.mxu0 %v4516_v37  ;;  %v4590_v37 = vld [vmem:[#allocation5 + $0x8a0] ss:$16 sps:$4 sm:$0xff]  }
  0x90   :  { %3282 = vmatpush1.bf16.msra.mxu1 %v4519_v38  ;;  %3242 = vmatprep.subr.bf16.mxu0 %v4524_v41  ;;  %v4593_v38 = vld [vmem:[#allocation5 + $0xaa0] ss:$16 sps:$4 sm:$0xff]  }
  0x91   :  { %3283 = vmatprep.subr.bf16.mxu1 %v4527_v42  ;;  %v4596_v41 = vld [vmem:[#allocation5 + $0x880] ss:$16 sps:$4 sm:$0xff]  }
  0x92   :  { %v4599_v42 = vld [vmem:[#allocation5 + $0xa80] ss:$16 sps:$4 sm:$0xff]  }
  0x93   :  { %3243 = vmatpush1.bf16.msra.mxu0 %v4522_v45  ;;  %v4604_v45 = vld [vmem:[#allocation5 + $0x864] ss:$16 sps:$4 sm:$0xff]  }
  0x94   :  { %3284 = vmatpush1.bf16.msra.mxu1 %v4525_v46  ;;  %3244 = vmatprep.subr.bf16.mxu0 %v4530_v47  ;;  %v4607_v46 = vld [vmem:[#allocation5 + $0xa64] ss:$16 sps:$4 sm:$0xff]   ;;  %v4602_v47 = vld [vmem:[#allocation5 + $0x860] ss:$16 sps:$4 sm:$0xff]  }
  0x95   :  { %3285 = vmatprep.subr.bf16.mxu1 %v4533_v48  ;;  %v4605_v48 = vld [vmem:[#allocation5 + $0xa60] ss:$16 sps:$4 sm:$0xff]  }
  0x97   :  { %3245 = vmatpush2.bf16.msra.mxu0 %v4528_v49  ;;  %v4610_v49 = vld [vmem:[#allocation5 + $0x844] ss:$16 sps:$4 sm:$0xff]  }
  0x98   :  { %3286 = vmatpush2.bf16.msra.mxu1 %v4531_v50  ;;  %3246 = vmatprep.subr.bf16.mxu0 %v4536_v51  ;;  %v4613_v50 = vld [vmem:[#allocation5 + $0xa44] ss:$16 sps:$4 sm:$0xff]   ;;  %v4608_v51 = vld [vmem:[#allocation5 + $0x840] ss:$16 sps:$4 sm:$0xff]  }
  0x99   :  { %3287 = vmatprep.subr.bf16.mxu1 %v4539_v52  ;;  %v4611_v52 = vld [vmem:[#allocation5 + $0xa40] ss:$16 sps:$4 sm:$0xff]  }
  0x9b   :  { %3247 = vmatpush2.bf16.msra.mxu0 %v4534_v53  ;;  %v4616_v53 = vld [vmem:[#allocation5 + $0x824] ss:$16 sps:$4 sm:$0xff]  }
  0x9c   :  { %3288 = vmatpush2.bf16.msra.mxu1 %v4537_v54  ;;  %3248 = vmatprep.subr.bf16.mxu0 %v4542_v57  ;;  %v4619_v54 = vld [vmem:[#allocation5 + $0xa24] ss:$16 sps:$4 sm:$0xff]   ;;  %v4614_v57 = vld [vmem:[#allocation5 + $0x820] ss:$16 sps:$4 sm:$0xff]  }
  0x9d   :  { %3289 = vmatprep.subr.bf16.mxu1 %v4545_v58  ;;  %v4617_v58 = vld [vmem:[#allocation5 + $0xa20] ss:$16 sps:$4 sm:$0xff]  }
  0x9f   :  { %3249 = vmatpush2.bf16.msra.mxu0 %v4540_v59  ;;  %v4622_v59 = vld [vmem:[#allocation5 + $0x804] ss:$16 sps:$4 sm:$0xff]  }
  0xa0   :  { %3290 = vmatpush2.bf16.msra.mxu1 %v4543_v60  ;;  %3250 = vmatprep.subr.bf16.mxu0 %v4548_v61  ;;  %v4625_v60 = vld [vmem:[#allocation5 + $0xa04] ss:$16 sps:$4 sm:$0xff]   ;;  %v4620_v61 = vld [vmem:[#allocation5 + $0x800] ss:$16 sps:$4 sm:$0xff]  }
  0xa1   :  { %3291 = vmatprep.subr.bf16.mxu1 %v4551_v62  ;;  %v4623_v62 = vld [vmem:[#allocation5 + $0xa00] ss:$16 sps:$4 sm:$0xff]  }
  0xa3   :  { %3251 = vmatpush2.bf16.msra.mxu0 %v4546_v63  ;;  %v4628_v63 = vld [vmem:[#allocation5 + $0x9e4] ss:$16 sps:$4 sm:$0xff]  }
  0xa4   :  { %3292 = vmatpush2.bf16.msra.mxu1 %v4549_v0  ;;  %3252 = vmatprep.subr.bf16.mxu0 %v4554_v1  ;;  %v4631_v0 = vld [vmem:[#allocation5 + $0xbe4] ss:$16 sps:$4 sm:$0xff]   ;;  %v4626_v1 = vld [vmem:[#allocation5 + $0x9e0] ss:$16 sps:$4 sm:$0xff]  }
  0xa5   :  { %3293 = vmatprep.subr.bf16.mxu1 %v4557_v2  ;;  %v4629_v2 = vld [vmem:[#allocation5 + $0xbe0] ss:$16 sps:$4 sm:$0xff]  }
  0xa7   :  { %3253 = vmatpush2.bf16.msra.mxu0 %v4552_v3  ;;  %v4634_v3 = vld [vmem:[#allocation5 + $0x9c4] ss:$16 sps:$4 sm:$0xff]  }
  0xa8   :  { %3294 = vmatpush2.bf16.msra.mxu1 %v4555_v4  ;;  %3254 = vmatprep.subr.bf16.mxu0 %v4560_v5  ;;  %v4637_v4 = vld [vmem:[#allocation5 + $0xbc4] ss:$16 sps:$4 sm:$0xff]   ;;  %v4632_v5 = vld [vmem:[#allocation5 + $0x9c0] ss:$16 sps:$4 sm:$0xff]  }
  0xa9   :  { %3295 = vmatprep.subr.bf16.mxu1 %v4563_v6  ;;  %v4635_v6 = vld [vmem:[#allocation5 + $0xbc0] ss:$16 sps:$4 sm:$0xff]  }
  0xab   :  { %3255 = vmatpush2.bf16.msra.mxu0 %v4558_v7  ;;  %v4640_v7 = vld [vmem:[#allocation5 + $0x9a4] ss:$16 sps:$4 sm:$0xff]  }
  0xac   :  { %3296 = vmatpush2.bf16.msra.mxu1 %v4561_v8  ;;  %3256 = vmatprep.subr.bf16.mxu0 %v4566_v11  ;;  %v4643_v8 = vld [vmem:[#allocation5 + $0xba4] ss:$16 sps:$4 sm:$0xff]   ;;  %v4638_v11 = vld [vmem:[#allocation5 + $0x9a0] ss:$16 sps:$4 sm:$0xff]  }
  0xad   :  { %3297 = vmatprep.subr.bf16.mxu1 %v4569_v12  ;;  %v4641_v12 = vld [vmem:[#allocation5 + $0xba0] ss:$16 sps:$4 sm:$0xff]  }
  0xaf   :  { %3257 = vmatpush2.bf16.msra.mxu0 %v4564_v13  ;;  %v4646_v13 = vld [vmem:[#allocation5 + $0x984] ss:$16 sps:$4 sm:$0xff]  }
  0xb0   :  { %3298 = vmatpush2.bf16.msra.mxu1 %v4567_v14  ;;  %3258 = vmatprep.subr.bf16.mxu0 %v4572_v15  ;;  %v4649_v14 = vld [vmem:[#allocation5 + $0xb84] ss:$16 sps:$4 sm:$0xff]   ;;  %v4644_v15 = vld [vmem:[#allocation5 + $0x980] ss:$16 sps:$4 sm:$0xff]  }
  0xb1   :  { %3299 = vmatprep.subr.bf16.mxu1 %v4575_v16  ;;  %v4647_v16 = vld [vmem:[#allocation5 + $0xb80] ss:$16 sps:$4 sm:$0xff]  }
  0xb3   :  { %3259 = vmatpush2.bf16.msra.mxu0 %v4570_v17  ;;  %v4652_v17 = vld [vmem:[#allocation5 + $0x964] ss:$16 sps:$4 sm:$0xff]  }
  0xb4   :  { %3300 = vmatpush2.bf16.msra.mxu1 %v4573_v18  ;;  %3310 = vmatprep.subr.bf16.mxu0 %v4580_v19  ;;  %v4655_v18 = vld [vmem:[#allocation5 + $0xb64] ss:$16 sps:$4 sm:$0xff]   ;;  %v4650_v19 = vld [vmem:[#allocation5 + $0x960] ss:$16 sps:$4 sm:$0xff]  }
  0xb5   :  { %3351 = vmatprep.subr.bf16.mxu1 %v4583_v20  ;;  %v4653_v20 = vld [vmem:[#allocation5 + $0xb60] ss:$16 sps:$4 sm:$0xff]  }
  0xb6   :  { %3261 = vmatmul.mubr.bf16.vlgmr.msra.gmra.mxu0 %v5310_v21 }
  0xb7   :  { %3302 = vmatmul.mubr.bf16.vlgmr.msra.gmra.mxu1 %v5314_v22  ;;  %3311 = vmatpush1.bf16.msra.mxu0 %v4578_v23  ;;  %v4658_v23 = vld [vmem:[#allocation5 + $0x944] ss:$16 sps:$4 sm:$0xff]  }
  0xb8   :  { %3352 = vmatpush1.bf16.msra.mxu1 %v4581_v24  ;;  %3312 = vmatprep.subr.bf16.mxu0 %v4586_v25  ;;  %v4661_v24 = vld [vmem:[#allocation5 + $0xb44] ss:$16 sps:$4 sm:$0xff]   ;;  %v4656_v25 = vld [vmem:[#allocation5 + $0x940] ss:$16 sps:$4 sm:$0xff]  }
  0xb9   :  { %3353 = vmatprep.subr.bf16.mxu1 %v4589_v26  ;;  %3342 = vmatprep.mubr.bf16.mxu0 %v5326_v33  ;;  %v4659_v26 = vld [vmem:[#allocation5 + $0xb40] ss:$16 sps:$4 sm:$0xff]  }
  0xba   :  { %3383 = vmatprep.mubr.bf16.mxu1 %v5328_v34 }
  0xbb   :  { %3313 = vmatpush1.bf16.msra.mxu0 %v4584_v31  ;;  %v4662_v31 = vld [vmem:[#allocation5 + $0x920] ss:$16 sps:$4 sm:$0xff]  }
  0xbc   :  { %3354 = vmatpush1.bf16.msra.mxu1 %v4587_v32  ;;  %3314 = vmatprep.subr.bf16.mxu0 %v4592_v35  ;;  %v4665_v32 = vld [vmem:[#allocation5 + $0xb20] ss:$16 sps:$4 sm:$0xff]   ;;  %v4670_v35 = vld [vmem:[#allocation5 + $0x904] ss:$16 sps:$4 sm:$0xff]  }
  0xbd   :  { %3355 = vmatprep.subr.bf16.mxu1 %v4595_v36  ;;  %v4673_v36 = vld [vmem:[#allocation5 + $0xb04] ss:$16 sps:$4 sm:$0xff]  }
  0xbf   :  { %3315 = vmatpush1.bf16.msra.mxu0 %v4590_v37  ;;  %v5332_v37 = vld [vmem:[#allocation3 + $0x38] sm:$0xff] }
  0xc0   :  { %3356 = vmatpush1.bf16.msra.mxu1 %v4593_v38  ;;  %3316 = vmatprep.subr.bf16.mxu0 %v4598_v39  ;;  %v5334_v38 = vld [vmem:[#allocation3 + $0x30] sm:$0xff] }
  0xc1   :  { %3357 = vmatprep.subr.bf16.mxu1 %v4601_v40  ;;  %v4668_v39 = vld [vmem:[#allocation5 + $0x900] ss:$16 sps:$4 sm:$0xff]  }
  0xc2   :  { %v4671_v40 = vld [vmem:[#allocation5 + $0xb00] ss:$16 sps:$4 sm:$0xff]  }
  0xc3   :  { %3317 = vmatpush1.bf16.msra.mxu0 %v4596_v41  ;;  %v4678_v41 = vld [vmem:[#allocation5 + $0xce4] ss:$16 sps:$4 sm:$0xff]  }
  0xc4   :  { %3358 = vmatpush1.bf16.msra.mxu1 %v4599_v42  ;;  %3318 = vmatprep.subr.bf16.mxu0 %v4604_v45  ;;  %v4681_v42 = vld [vmem:[#allocation5 + $0xee4] ss:$16 sps:$4 sm:$0xff]   ;;  %v95_v45 = vcombine.high %v5332_v37, %v5332_v37 }
  0xc5   :  { %3359 = vmatprep.subr.bf16.mxu1 %v4607_v46  ;;  %v94_v46 = vcombine.high %v5334_v38, %v5334_v38 }
  0xc7   :  { %3319 = vmatpush1.bf16.msra.mxu0 %v4602_v47  ;;  %v5342_v47 = vpack.c.bf16 %v5316_v27, %v5316_v27  ;;  %v4682_v27 = vld [vmem:[#allocation5 + $0xcc0] ss:$16 sps:$4 sm:$0xff]  }
  0xc8   :  { %3360 = vmatpush1.bf16.msra.mxu1 %v4605_v48  ;;  %3320 = vmatprep.subr.bf16.mxu0 %v4610_v49  ;;  %v5346_v48 = vpack.c.bf16 %v5318_v28, %v5318_v28  ;;  %v4676_v49 = vld [vmem:[#allocation5 + $0xce0] ss:$16 sps:$4 sm:$0xff]  }
  0xc9   :  { %3361 = vmatprep.subr.bf16.mxu1 %v4613_v50  ;;  %v4679_v50 = vld [vmem:[#allocation5 + $0xee0] ss:$16 sps:$4 sm:$0xff]  }
  0xca   :  { %v4685_v28 = vld [vmem:[#allocation5 + $0xec0] ss:$16 sps:$4 sm:$0xff]  }
  0xcb   :  { %3321 = vmatpush1.bf16.msra.mxu0 %v4608_v51  ;;  %v4684_v51 = vld [vmem:[#allocation5 + $0xcc4] ss:$16 sps:$4 sm:$0xff]  }
  0xcc   :  { %3362 = vmatpush1.bf16.msra.mxu1 %v4611_v52  ;;  %3322 = vmatprep.subr.bf16.mxu0 %v4616_v53  ;;  %v4687_v52 = vld [vmem:[#allocation5 + $0xec4] ss:$16 sps:$4 sm:$0xff]   ;;  %v5348_v53 = vpack.c.bf16 %v95_v45, %v95_v45 }
  0xcd   :  { %3363 = vmatprep.subr.bf16.mxu1 %v4619_v54  ;;  %v5350_v54 = vpack.c.bf16 %v94_v46, %v94_v46  ;;  %v4750_v45 = vld [vmem:[#allocation5 + $0xd64] ss:$16 sps:$4 sm:$0xff]  }
  0xce   :  { %v4753_v46 = vld [vmem:[#allocation5 + $0xf04] ss:$16 sps:$4 sm:$0xff]  }
  0xcf   :  { %3323 = vmatpush1.bf16.msra.mxu0 %v4614_v57  ;;  %v4690_v57 = vld [vmem:[#allocation5 + $0xca4] ss:$16 sps:$4 sm:$0xff]  }
  0xd0   :  { %3364 = vmatpush1.bf16.msra.mxu1 %v4617_v58  ;;  %3324 = vmatprep.subr.bf16.mxu0 %v4622_v59  ;;  %v4693_v58 = vld [vmem:[#allocation5 + $0xea4] ss:$16 sps:$4 sm:$0xff]   ;;  %v4688_v59 = vld [vmem:[#allocation5 + $0xca0] ss:$16 sps:$4 sm:$0xff]  }
  0xd1   :  { %3365 = vmatprep.subr.bf16.mxu1 %v4625_v60  ;;  %v4691_v60 = vld [vmem:[#allocation5 + $0xea0] ss:$16 sps:$4 sm:$0xff]  }
  0xd3   :  { %3325 = vmatpush1.bf16.msra.mxu0 %v4620_v61  ;;  %v4696_v61 = vld [vmem:[#allocation5 + $0xc84] ss:$16 sps:$4 sm:$0xff]  }
  0xd4   :  { %3366 = vmatpush1.bf16.msra.mxu1 %v4623_v62  ;;  %3326 = vmatprep.subr.bf16.mxu0 %v4628_v63  ;;  %v4699_v62 = vld [vmem:[#allocation5 + $0xe84] ss:$16 sps:$4 sm:$0xff]   ;;  %v4694_v63 = vld [vmem:[#allocation5 + $0xc80] ss:$16 sps:$4 sm:$0xff]  }
  0xd5   :  { %3367 = vmatprep.subr.bf16.mxu1 %v4631_v0  ;;  %v4697_v0 = vld [vmem:[#allocation5 + $0xe80] ss:$16 sps:$4 sm:$0xff]  }
  0xd7   :  { %3327 = vmatpush2.bf16.msra.mxu0 %v4626_v1  ;;  %v4702_v1 = vld [vmem:[#allocation5 + $0xc64] ss:$16 sps:$4 sm:$0xff]  }
  0xd8   :  { %3368 = vmatpush2.bf16.msra.mxu1 %v4629_v2  ;;  %3328 = vmatprep.subr.bf16.mxu0 %v4634_v3  ;;  %v4705_v2 = vld [vmem:[#allocation5 + $0xe64] ss:$16 sps:$4 sm:$0xff]   ;;  %v4700_v3 = vld [vmem:[#allocation5 + $0xc60] ss:$16 sps:$4 sm:$0xff]  }
  0xd9   :  { %3369 = vmatprep.subr.bf16.mxu1 %v4637_v4  ;;  %v4703_v4 = vld [vmem:[#allocation5 + $0xe60] ss:$16 sps:$4 sm:$0xff]  }
  0xdb   :  { %3329 = vmatpush2.bf16.msra.mxu0 %v4632_v5  ;;  %v4708_v5 = vld [vmem:[#allocation5 + $0xc44] ss:$16 sps:$4 sm:$0xff]  }
  0xdc   :  { %3370 = vmatpush2.bf16.msra.mxu1 %v4635_v6  ;;  %3330 = vmatprep.subr.bf16.mxu0 %v4640_v7  ;;  %v4711_v6 = vld [vmem:[#allocation5 + $0xe44] ss:$16 sps:$4 sm:$0xff]   ;;  %v4706_v7 = vld [vmem:[#allocation5 + $0xc40] ss:$16 sps:$4 sm:$0xff]  }
  0xdd   :  { %3371 = vmatprep.subr.bf16.mxu1 %v4643_v8  ;;  %v4709_v8 = vld [vmem:[#allocation5 + $0xe40] ss:$16 sps:$4 sm:$0xff]  }
  0xdf   :  { %3331 = vmatpush2.bf16.msra.mxu0 %v4638_v11  ;;  %v4714_v11 = vld [vmem:[#allocation5 + $0xc24] ss:$16 sps:$4 sm:$0xff]  }
  0xe0   :  { %3372 = vmatpush2.bf16.msra.mxu1 %v4641_v12  ;;  %3332 = vmatprep.subr.bf16.mxu0 %v4646_v13  ;;  %v4717_v12 = vld [vmem:[#allocation5 + $0xe24] ss:$16 sps:$4 sm:$0xff]   ;;  %v4712_v13 = vld [vmem:[#allocation5 + $0xc20] ss:$16 sps:$4 sm:$0xff]  }
  0xe1   :  { %3373 = vmatprep.subr.bf16.mxu1 %v4649_v14  ;;  %v4715_v14 = vld [vmem:[#allocation5 + $0xe20] ss:$16 sps:$4 sm:$0xff]  }
  0xe3   :  { %3333 = vmatpush2.bf16.msra.mxu0 %v4644_v15  ;;  %v4720_v15 = vld [vmem:[#allocation5 + $0xc04] ss:$16 sps:$4 sm:$0xff]  }
  0xe4   :  { %3374 = vmatpush2.bf16.msra.mxu1 %v4647_v16  ;;  %3334 = vmatprep.subr.bf16.mxu0 %v4652_v17  ;;  %v4723_v16 = vld [vmem:[#allocation5 + $0xe04] ss:$16 sps:$4 sm:$0xff]   ;;  %v4718_v17 = vld [vmem:[#allocation5 + $0xc00] ss:$16 sps:$4 sm:$0xff]  }
  0xe5   :  { %3375 = vmatprep.subr.bf16.mxu1 %v4655_v18  ;;  %v4721_v18 = vld [vmem:[#allocation5 + $0xe00] ss:$16 sps:$4 sm:$0xff]  }
  0xe7   :  { %3335 = vmatpush2.bf16.msra.mxu0 %v4650_v19  ;;  %v4726_v19 = vld [vmem:[#allocation5 + $0xde4] ss:$16 sps:$4 sm:$0xff]  }
  0xe8   :  { %3376 = vmatpush2.bf16.msra.mxu1 %v4653_v20  ;;  %3336 = vmatprep.subr.bf16.mxu0 %v4658_v23  ;;  %v4729_v20 = vld [vmem:[#allocation5 + $0xf84] ss:$16 sps:$4 sm:$0xff]   ;;  %v4724_v23 = vld [vmem:[#allocation5 + $0xde0] ss:$16 sps:$4 sm:$0xff]  }
  0xe9   :  { %3377 = vmatprep.subr.bf16.mxu1 %v4661_v24  ;;  %v4727_v24 = vld [vmem:[#allocation5 + $0xf80] ss:$16 sps:$4 sm:$0xff]  }
  0xeb   :  { %3337 = vmatpush2.bf16.msra.mxu0 %v4656_v25  ;;  %v4732_v25 = vld [vmem:[#allocation5 + $0xdc4] ss:$16 sps:$4 sm:$0xff]  }
  0xec   :  { %3378 = vmatpush2.bf16.msra.mxu1 %v4659_v26  ;;  %3338 = vmatprep.subr.bf16.mxu0 %v4664_v29  ;;  %v4735_v26 = vld [vmem:[#allocation5 + $0xf64] ss:$16 sps:$4 sm:$0xff]   ;;  %v4730_v29 = vld [vmem:[#allocation5 + $0xdc0] ss:$16 sps:$4 sm:$0xff]  }
  0xed   :  { %3379 = vmatprep.subr.bf16.mxu1 %v4667_v30  ;;  %v4733_v30 = vld [vmem:[#allocation5 + $0xf60] ss:$16 sps:$4 sm:$0xff]  }
  0xef   :  { %3339 = vmatpush2.bf16.msra.mxu0 %v4662_v31  ;;  %v4738_v31 = vld [vmem:[#allocation5 + $0xda4] ss:$16 sps:$4 sm:$0xff]  }
  0xf0   :  { %3380 = vmatpush2.bf16.msra.mxu1 %v4665_v32  ;;  %3340 = vmatprep.subr.bf16.mxu0 %v4670_v35  ;;  %v4741_v32 = vld [vmem:[#allocation5 + $0xf44] ss:$16 sps:$4 sm:$0xff]   ;;  %v4736_v35 = vld [vmem:[#allocation5 + $0xda0] ss:$16 sps:$4 sm:$0xff]  }
  0xf1   :  { %3381 = vmatprep.subr.bf16.mxu1 %v4673_v36  ;;  %v4739_v36 = vld [vmem:[#allocation5 + $0xf40] ss:$16 sps:$4 sm:$0xff]  }
  0xf3   :  { %3341 = vmatpush2.bf16.msra.mxu0 %v4668_v39  ;;  %v4744_v39 = vld [vmem:[#allocation5 + $0xd84] ss:$16 sps:$4 sm:$0xff]  }
  0xf4   :  { %3382 = vmatpush2.bf16.msra.mxu1 %v4671_v40  ;;  %3392 = vmatprep.subr.bf16.mxu0 %v4678_v41  ;;  %v4747_v40 = vld [vmem:[#allocation5 + $0xf24] ss:$16 sps:$4 sm:$0xff]   ;;  %v4742_v41 = vld [vmem:[#allocation5 + $0xd80] ss:$16 sps:$4 sm:$0xff]  }
  0xf5   :  { %3433 = vmatprep.subr.bf16.mxu1 %v4681_v42  ;;  %v4745_v42 = vld [vmem:[#allocation5 + $0xf20] ss:$16 sps:$4 sm:$0xff]  }
  0xf6   :  { %3343 = vmatmul.mubr.bf16.vlgmr.msra.gmra.mxu0 %v5342_v47 }
  0xf7   :  { %3384 = vmatmul.mubr.bf16.vlgmr.msra.gmra.mxu1 %v5346_v48  ;;  %3393 = vmatpush1.bf16.msra.mxu0 %v4676_v49  ;;  %v4748_v49 = vld [vmem:[#allocation5 + $0xd60] ss:$16 sps:$4 sm:$0xff]  }
  0xf8   :  { %3434 = vmatpush1.bf16.msra.mxu1 %v4679_v50  ;;  %3394 = vmatprep.subr.bf16.mxu0 %v4684_v51  ;;  %v4751_v50 = vld [vmem:[#allocation5 + $0xf00] ss:$16 sps:$4 sm:$0xff]   ;;  %v4757_v51 = vld [vmem:[#allocation5 + $0xd44] ss:$16 sps:$4 sm:$0xff]  }
  0xf9   :  { %3435 = vmatprep.subr.bf16.mxu1 %v4687_v52  ;;  %4373 = vmatprep.mubr.msk.bf16.mxu1 %vm3142_vm0, %v5348_v53  ;;  %v4760_v52 = vld [vmem:[#allocation5 + $0xec] ss:$16 sps:$4 sm:$0xff]  }
  0xfa   :  { %3424 = vmatprep.mubr.bf16.mxu0 %v5350_v54 }
  0xfb   :  { %3395 = vmatpush1.bf16.msra.mxu0 %v4682_v27  ;;  %v5359_v27 = vpack.c.bf16 %v5332_v37, %v5332_v37  ;;  %v4769_v37 = vld [vmem:[#allocation5 + $0xd04] ss:$16 sps:$4 sm:$0xff]  }
  0xfc   :  { %3436 = vmatpush1.bf16.msra.mxu1 %v4685_v28  ;;  %3396 = vmatprep.subr.bf16.mxu0 %v4690_v57  ;;  %v4755_v28 = vld [vmem:[#allocation5 + $0xd40] ss:$16 sps:$4 sm:$0xff]   ;;  %v4758_v57 = vld [vmem:[#allocation5 + $0xe8] ss:$16 sps:$4 sm:$0xff]  }
  0xfd   :  { %3437 = vmatprep.subr.bf16.mxu1 %v4693_v58  ;;  %v622_v58 = vlaneseq }
  0xff   :  { %3397 = vmatpush1.bf16.msra.mxu0 %v4688_v59  ;;  %v4763_v59 = vld [vmem:[#allocation5 + $0xd24] ss:$16 sps:$4 sm:$0xff]  }
 0x100   :  { %3438 = vmatpush1.bf16.msra.mxu1 %v4691_v60  ;;  %3398 = vmatprep.subr.bf16.mxu0 %v4696_v61  ;;  %v4766_v60 = vld [vmem:[#allocation5 + $0xcc] ss:$16 sps:$4 sm:$0xff]   ;;  %v4761_v61 = vld [vmem:[#allocation5 + $0xd20] ss:$16 sps:$4 sm:$0xff]  }
 0x101   :  { %3439 = vmatprep.subr.bf16.mxu1 %v4699_v62  ;;  %v4764_v62 = vld [vmem:[#allocation5 + $0xc8] ss:$16 sps:$4 sm:$0xff]  }
 0x103   :  { %3399 = vmatpush1.bf16.msra.mxu0 %v4694_v63  ;;  %v5362_v63 = vshrl.u32 %v622_v58, 7  ;;  %v4807_v58 = vld [vmem:[#allocation5 + $0x248] ss:$16 sps:$4 sm:$0xff]  }
 0x104   :  { %3440 = vmatpush1.bf16.msra.mxu1 %v4697_v0  ;;  %3400 = vmatprep.subr.bf16.mxu0 %v4702_v1  ;;  %v4772_v0 = vld [vmem:[#allocation5 + $0xac] ss:$16 sps:$4 sm:$0xff]   ;;  %v4767_v1 = vld [vmem:[#allocation5 + $0xd00] ss:$16 sps:$4 sm:$0xff]  }
 0x105   :  { %3441 = vmatprep.subr.bf16.mxu1 %v4705_v2  ;;  %v4770_v2 = vld [vmem:[#allocation5 + $0xa8] ss:$16 sps:$4 sm:$0xff]  }
 0x107   :  { %3401 = vmatpush1.bf16.msra.mxu0 %v4700_v3  ;;  %v620_v3 = vld [vmem:[#allocation7] sm:$0xf] }
 0x108   :  { %3442 = vmatpush1.bf16.msra.mxu1 %v4703_v4  ;;  %3402 = vmatprep.subr.bf16.mxu0 %v4708_v5  ;;  %v624_v4 = vsub.s32 0, %v5362_v63  ;;  %v4776_v5 = vld [vmem:[#allocation5 + $0x8c] ss:$16 sps:$4 sm:$0xff]  }
 0x109   :  { %3443 = vmatprep.subr.bf16.mxu1 %v4711_v6  ;;  %v4779_v6 = vld [vmem:[#allocation5 + $0x2ec] ss:$16 sps:$4 sm:$0xff]  }
 0x10b   :  { %3403 = vmatpush1.bf16.msra.mxu0 %v4706_v7  ;;  %v628_v7 = vsub.s32 1, %v5362_v63 }
 0x10c   :  { %3444 = vmatpush1.bf16.msra.mxu1 %v4709_v8  ;;  %3404 = vmatprep.subr.bf16.mxu0 %v4714_v11  ;;  %v5369_v8 = vpack.c.bf16 %v5334_v38, %v5334_v38  ;;  %v4774_v11 = vld [vmem:[#allocation5 + $0x88] ss:$16 sps:$4 sm:$0xff]  }
 0x10d   :  { %3445 = vmatprep.subr.bf16.mxu1 %v4717_v12  ;;  %v4777_v12 = vld [vmem:[#allocation5 + $0x2e8] ss:$16 sps:$4 sm:$0xff]  }
 0x10f   :  { %3405 = vmatpush1.bf16.msra.mxu0 %v4712_v13  ;;  %v4782_v13 = vld [vmem:[#allocation5 + $0x6c] ss:$16 sps:$4 sm:$0xff]  }
 0x110   :  { %3446 = vmatpush1.bf16.msra.mxu1 %v4715_v14  ;;  %3406 = vmatprep.subr.bf16.mxu0 %v4720_v15  ;;  %v4785_v14 = vld [vmem:[#allocation5 + $0x2cc] ss:$16 sps:$4 sm:$0xff]   ;;  %v629_v15 = vrot.slane %v620_v3, %v628_v7 }
 0x111   :  { %3447 = vmatprep.subr.bf16.mxu1 %v4723_v16 }
 0x113   :  { %3407 = vmatpush1.bf16.msra.mxu0 %v4718_v17 }
 0x114   :  { %3448 = vmatpush1.bf16.msra.mxu1 %v4721_v18  ;;  %3408 = vmatprep.subr.bf16.mxu0 %v4726_v19  ;;  %v4780_v18 = vld [vmem:[#allocation5 + $0x68] ss:$16 sps:$4 sm:$0xff]  }
 0x115   :  { %3455 = vmatprep.subr.bf16.mxu1 %v4729_v20  ;;  %v4783_v19 = vld [vmem:[#allocation5 + $0x2c8] ss:$16 sps:$4 sm:$0xff]  }
 0x117   :  { %3409 = vmatpush2.bf16.msra.mxu0 %v4724_v23 }
 0x118   :  { %3456 = vmatpush2.bf16.msra.mxu1 %v4727_v24  ;;  %3410 = vmatprep.subr.bf16.mxu0 %v4732_v25  ;;  %v4788_v24 = vld [vmem:[#allocation5 + $0x4c] ss:$16 sps:$4 sm:$0xff]  }
 0x119   :  { %3457 = vmatprep.subr.bf16.mxu1 %v4735_v26  ;;  %v4791_v25 = vld [vmem:[#allocation5 + $0x2ac] ss:$16 sps:$4 sm:$0xff]  }
 0x11b   :  { %3411 = vmatpush2.bf16.msra.mxu0 %v4730_v29 }
 0x11c   :  { %3458 = vmatpush2.bf16.msra.mxu1 %v4733_v30  ;;  %3412 = vmatprep.subr.bf16.mxu0 %v4738_v31 }
 0x11d   :  { %3459 = vmatprep.subr.bf16.mxu1 %v4741_v32 }
 0x11f   :  { %3413 = vmatpush2.bf16.msra.mxu0 %v4736_v35  ;;  %v4786_v35 = vld [vmem:[#allocation5 + $0x48] ss:$16 sps:$4 sm:$0xff]  }
 0x120   :  { %3460 = vmatpush2.bf16.msra.mxu1 %v4739_v36  ;;  %3414 = vmatprep.subr.bf16.mxu0 %v4744_v39  ;;  %v4789_v36 = vld [vmem:[#allocation5 + $0x2a8] ss:$16 sps:$4 sm:$0xff]  }
 0x121   :  { %3461 = vmatprep.subr.bf16.mxu1 %v4747_v40 }
 0x123   :  { %3415 = vmatpush2.bf16.msra.mxu0 %v4742_v41  ;;  %v4794_v41 = vld [vmem:[#allocation5 + $0x2c] ss:$16 sps:$4 sm:$0xff]  }
 0x124   :  { %3462 = vmatpush2.bf16.msra.mxu1 %v4745_v42  ;;  %3416 = vmatprep.subr.bf16.mxu0 %v4750_v45  ;;  %v4797_v42 = vld [vmem:[#allocation5 + $0x28c] ss:$16 sps:$4 sm:$0xff]   ;;  %v4792_v45 = vld [vmem:[#allocation5 + $0x28] ss:$16 sps:$4 sm:$0xff]  }
 0x125   :  { %3463 = vmatprep.subr.bf16.mxu1 %v4753_v46  ;;  %v4795_v46 = vld [vmem:[#allocation5 + $0x288] ss:$16 sps:$4 sm:$0xff]  }
 0x127   :  { %3417 = vmatpush2.bf16.msra.mxu0 %v4748_v49  ;;  %v4803_v49 = vld [vmem:[#allocation5 + $0x26c] ss:$16 sps:$4 sm:$0xff]  }
 0x128   :  { %3464 = vmatpush2.bf16.msra.mxu1 %v4751_v50  ;;  %3418 = vmatprep.subr.bf16.mxu0 %v4757_v51  ;;  %v4798_v50 = vld [vmem:[#allocation5 + $0x8] ss:$16 sps:$4 sm:$0xff]  }
 0x129   :  { %3474 = vmatprep.subr.bf16.mxu1 %v4760_v52  ;;  %v4801_v51 = vld [vmem:[#allocation5 + $0x268] ss:$16 sps:$4 sm:$0xff]   ;;  %v4806_v52 = vld [vmem:[#allocation5 + $0x1ec] ss:$16 sps:$4 sm:$0xff]  }
 0x12b   :  { %3466 = vmatmul.mubr.bf16.vlgmr.msra.gmra.mxu1 %v5359_v27  ;;  %3419 = vmatpush2.bf16.msra.mxu0 %v4755_v28  ;;  %v4809_v28 = vld [vmem:[#allocation5 + $0x24c] ss:$16 sps:$4 sm:$0xff]  }
 0x12c   :  { %3475 = vmatpush1.bf16.msra.mxu1 %v4758_v57  ;;  %3420 = vmatprep.subr.bf16.mxu0 %v4763_v59  ;;  %v4804_v57 = vld [vmem:[#allocation5 + $0x1e8] ss:$16 sps:$4 sm:$0xff]   ;;  %v4812_v59 = vld [vmem:[#allocation5 + $0x1cc] ss:$16 sps:$4 sm:$0xff]  }
 0x12d   :  { %3476 = vmatprep.subr.bf16.mxu1 %v4766_v60  ;;  %3506 = vmatprep.mubr.bf16.mxu1 %v5282_v55  ;;  %v625_v55 = vrot.slane %v620_v3, %v624_v4  ;;  %v4815_v60 = vld [vmem:[#allocation5 + $0x22c] ss:$16 sps:$4 sm:$0xff]  }
 0x12e   :  { %v4824_v3 = vld [vmem:[#allocation5 + $0x18c] ss:$16 sps:$4 sm:$0xff]  }
 0x12f   :  { %3421 = vmatpush2.bf16.msra.mxu0 %v4761_v61  ;;  %v4810_v61 = vld [vmem:[#allocation5 + $0x1c8] ss:$16 sps:$4 sm:$0xff]  }
 0x130   :  { %3477 = vmatpush1.bf16.msra.mxu1 %v4764_v62  ;;  %3422 = vmatprep.subr.bf16.mxu0 %v4769_v37  ;;  %v4813_v62 = vld [vmem:[#allocation5 + $0x228] ss:$16 sps:$4 sm:$0xff]   ;;  %v4818_v37 = vld [vmem:[#allocation5 + $0x1ac] ss:$16 sps:$4 sm:$0xff]  }
 0x131   :  { %3478 = vmatprep.subr.bf16.mxu1 %v4772_v0  ;;  %v4821_v0 = vld [vmem:[#allocation5 + $0x20c] ss:$16 sps:$4 sm:$0xff]  }
 0x133   :  { %3423 = vmatpush2.bf16.msra.mxu0 %v4767_v1  ;;  %v4816_v1 = vld [vmem:[#allocation5 + $0x1a8] ss:$16 sps:$4 sm:$0xff]  }
 0x134   :  { %3479 = vmatpush1.bf16.msra.mxu1 %v4770_v2  ;;  %3515 = vmatprep.subr.bf16.mxu0 %v4779_v6  ;;  %v4819_v2 = vld [vmem:[#allocation5 + $0x208] ss:$16 sps:$4 sm:$0xff]  }
 0x135   :  { %3480 = vmatprep.subr.bf16.mxu1 %v4776_v5  ;;  %v4827_v5 = vld [vmem:[#allocation5 + $0x3ec] ss:$16 sps:$4 sm:$0xff]   ;;  %v4822_v6 = vld [vmem:[#allocation5 + $0x188] ss:$16 sps:$4 sm:$0xff]  }
 0x136   :  { %v3180_v16 = vpop.f32.mrf.mxu0  ;;  %3425 = vmatmul.mubr.bf16.vlgmr.msra.gmra.mxu0 %v5369_v8 }
 0x137   :  { %v3221_v17 = vpop.f32.mrf.mxu1  ;;  %v3181_v38 = vadd.f32 %v3180_v16, %v625_v55  ;;  %3516 = vmatpush1.bf16.msra.mxu0 %v4777_v12  ;;  %3547 = vmatprep.mubr.bf16.mxu0 %v5284_v56  ;;  %v4800_v56 = vld [vmem:[#allocation5 + $0xc] ss:$16 sps:$4 sm:$0xff]   ;;  %v4825_v55 = vld [vmem:[#allocation5 + $0x3e8] ss:$16 sps:$4 sm:$0xff]  }
 0x138   :  { %3481 = vmatpush1.bf16.msra.mxu1 %v4774_v11  ;;  %v3182_v20 = vpop.f32.mrf.mxu0  ;;  %3517 = vmatprep.subr.bf16.mxu0 %v4785_v14  ;;  %v4830_v11 = vld [vmem:[#allocation5 + $0x16c] ss:$16 sps:$4 sm:$0xff]   ;;  %v4831_v14 = vld [vmem:[#allocation5 + $0x3c8] ss:$16 sps:$4 sm:$0xff]  }
 0x139   :  { %v3223_v23 = vpop.f32.mrf.mxu1  ;;  %3482 = vmatprep.subr.bf16.mxu1 %v4782_v13  ;;  %v5376_v26 = vadd.f32 %v3221_v17, %v3181_v38  ;;  %v3183_v29 = vadd.f32 %v3182_v20, %v629_v15  ;;  %v4833_v12 = vld [vmem:[#allocation5 + $0x3cc] ss:$16 sps:$4 sm:$0xff]   ;;  %v4828_v13 = vld [vmem:[#allocation5 + $0x168] ss:$16 sps:$4 sm:$0xff]  }
 0x13a   :  { %v3184_v30 = vpop.f32.mrf.mxu0  ;;  %v4836_v15 = vld [vmem:[#allocation5 + $0x14c] ss:$16 sps:$4 sm:$0xff]   ;;  %v4834_v17 = vld [vmem:[#allocation5 + $0x148] ss:$16 sps:$4 sm:$0xff]  }
 0x13b   :  { %v3225_v31 = vpop.f32.mrf.mxu1  ;;  %v5379_v32 = vadd.f32 %v3223_v23, %v3183_v29  ;;  %3518 = vmatpush1.bf16.msra.mxu0 %v4783_v19  ;;  %v4839_v16 = vld [vmem:[#allocation5 + $0x3ac] ss:$16 sps:$4 sm:$0xff]   ;;  %v4837_v38 = vld [vmem:[#allocation5 + $0x3a8] ss:$16 sps:$4 sm:$0xff]  }
 0x13c   :  { %3483 = vmatpush1.bf16.msra.mxu1 %v4780_v18  ;;  %v3185_v39 = vpop.f32.mrf.mxu0  ;;  %3519 = vmatprep.subr.bf16.mxu0 %v4791_v25  ;;  %v4842_v18 = vld [vmem:[#allocation5 + $0x12c] ss:$16 sps:$4 sm:$0xff]   ;;  %v4840_v20 = vld [vmem:[#allocation5 + $0x128] ss:$16 sps:$4 sm:$0xff]  }
 0x13d   :  { %v3226_v40 = vpop.f32.mrf.mxu1  ;;  %3484 = vmatprep.subr.bf16.mxu1 %v4788_v24  ;;  %v4845_v19 = vld [vmem:[#allocation5 + $0x38c] ss:$16 sps:$4 sm:$0xff]   ;;  %v4843_v23 = vld [vmem:[#allocation5 + $0x388] ss:$16 sps:$4 sm:$0xff]  }
 0x13e   :  { %v4848_v24 = vld [vmem:[#allocation5 + $0x10c] ss:$16 sps:$4 sm:$0xff]   ;;  %v4846_v29 = vld [vmem:[#allocation5 + $0x108] ss:$16 sps:$4 sm:$0xff]  }
 0x13f   :  { %3520 = vmatpush1.bf16.msra.mxu0 %v4789_v36  ;;  %v4851_v25 = vld [vmem:[#allocation5 + $0x36c] ss:$16 sps:$4 sm:$0xff]   ;;  %v4849_v30 = vld [vmem:[#allocation5 + $0x368] ss:$16 sps:$4 sm:$0xff]  }
 0x140   :  { %3485 = vmatpush1.bf16.msra.mxu1 %v4786_v35  ;;  %3521 = vmatprep.subr.bf16.mxu0 %v4797_v42  ;;  %v4854_v31 = vld [vmem:[#allocation5 + $0x34c] ss:$16 sps:$4 sm:$0xff]   ;;  %v4852_v36 = vld [vmem:[#allocation5 + $0x348] ss:$16 sps:$4 sm:$0xff]  }
 0x141   :  { %3486 = vmatprep.subr.bf16.mxu1 %v4794_v41  ;;  %v4857_v35 = vld [vmem:[#allocation5 + $0x4ec] ss:$16 sps:$4 sm:$0xff]   ;;  %v4855_v39 = vld [vmem:[#allocation5 + $0x4e8] ss:$16 sps:$4 sm:$0xff]  }
 0x142   :  { %v4860_v40 = vld [vmem:[#allocation5 + $0x32c] ss:$16 sps:$4 sm:$0xff]   ;;  %v4858_v42 = vld [vmem:[#allocation5 + $0x328] ss:$16 sps:$4 sm:$0xff]  }
 0x143   :  { %3522 = vmatpush1.bf16.msra.mxu0 %v4795_v46  ;;  %v4863_v41 = vld [vmem:[#allocation5 + $0x4cc] ss:$16 sps:$4 sm:$0xff]  }
 0x144   :  { %3487 = vmatpush1.bf16.msra.mxu1 %v4792_v45  ;;  %3523 = vmatprep.subr.bf16.mxu0 %v4803_v49  ;;  %v4861_v45 = vld [vmem:[#allocation5 + $0x4c8] ss:$16 sps:$4 sm:$0xff]   ;;  %v4866_v46 = vld [vmem:[#allocation5 + $0x30c] ss:$16 sps:$4 sm:$0xff]  }
 0x145   :  { %3488 = vmatprep.subr.bf16.mxu1 %v4800_v56  ;;  %v4869_v56 = vld [vmem:[#allocation5 + $0x4ac] ss:$16 sps:$4 sm:$0xff]   ;;  %v4864_v49 = vld [vmem:[#allocation5 + $0x308] ss:$16 sps:$4 sm:$0xff]  }
 0x147   :  { %3524 = vmatpush1.bf16.msra.mxu0 %v4801_v51  ;;  %v4872_v51 = vld [vmem:[#allocation5 + $0x48c] ss:$16 sps:$4 sm:$0xff]  }
 0x148   :  { %3489 = vmatpush1.bf16.msra.mxu1 %v4798_v50  ;;  %3525 = vmatprep.subr.bf16.mxu0 %v4809_v28  ;;  %v4867_v50 = vld [vmem:[#allocation5 + $0x4a8] ss:$16 sps:$4 sm:$0xff]  }
 0x149   :  { %3490 = vmatprep.subr.bf16.mxu1 %v4806_v52  ;;  %v4875_v52 = vld [vmem:[#allocation5 + $0x6ec] ss:$16 sps:$4 sm:$0xff]   ;;  %v4870_v28 = vld [vmem:[#allocation5 + $0x488] ss:$16 sps:$4 sm:$0xff]  }
 0x14b   :  { %3526 = vmatpush1.bf16.msra.mxu0 %v4807_v58  ;;  %v4881_v58 = vld [vmem:[#allocation5 + $0x6cc] ss:$16 sps:$4 sm:$0xff]  }
 0x14c   :  { %3491 = vmatpush2.bf16.msra.mxu1 %v4804_v57  ;;  %3527 = vmatprep.subr.bf16.mxu0 %v4815_v60  ;;  %v4878_v57 = vld [vmem:[#allocation5 + $0x46c] ss:$16 sps:$4 sm:$0xff]  }
 0x14d   :  { %3492 = vmatprep.subr.bf16.mxu1 %v4812_v59 }
 0x14f   :  { %3528 = vmatpush1.bf16.msra.mxu0 %v4813_v62  ;;  %v4879_v62 = vld [vmem:[#allocation5 + $0x6c8] ss:$16 sps:$4 sm:$0xff]  }
 0x150   :  { %3493 = vmatpush2.bf16.msra.mxu1 %v4810_v61  ;;  %3529 = vmatprep.subr.bf16.mxu0 %v4821_v0  ;;  %v4876_v61 = vld [vmem:[#allocation5 + $0x468] ss:$16 sps:$4 sm:$0xff]  }
 0x151   :  { %3494 = vmatprep.subr.bf16.mxu1 %v4818_v37 }
 0x153   :  { %3530 = vmatpush1.bf16.msra.mxu0 %v4819_v2  ;;  %v4887_v2 = vld [vmem:[#allocation5 + $0x6ac] ss:$16 sps:$4 sm:$0xff]  }
 0x154   :  { %3495 = vmatpush2.bf16.msra.mxu1 %v4816_v1  ;;  %3531 = vmatprep.subr.bf16.mxu0 %v4827_v5  ;;  %v4884_v1 = vld [vmem:[#allocation5 + $0x44c] ss:$16 sps:$4 sm:$0xff]  }
 0x155   :  { %3496 = vmatprep.subr.bf16.mxu1 %v4824_v3 }
 0x157   :  { %3532 = vmatpush2.bf16.msra.mxu0 %v4825_v55 }
 0x158   :  { %3497 = vmatpush2.bf16.msra.mxu1 %v4822_v6  ;;  %3533 = vmatprep.subr.bf16.mxu0 %v4833_v12 }
 0x159   :  { %3498 = vmatprep.subr.bf16.mxu1 %v4830_v11  ;;  %v4885_v11 = vld [vmem:[#allocation5 + $0x6a8] ss:$16 sps:$4 sm:$0xff]  }
 0x15b   :  { %3534 = vmatpush2.bf16.msra.mxu0 %v4831_v14  ;;  %v4890_v14 = vld [vmem:[#allocation5 + $0x42c] ss:$16 sps:$4 sm:$0xff]  }
 0x15c   :  { %3499 = vmatpush2.bf16.msra.mxu1 %v4828_v13  ;;  %3535 = vmatprep.subr.bf16.mxu0 %v4839_v16  ;;  %v4888_v16 = vld [vmem:[#allocation5 + $0x428] ss:$16 sps:$4 sm:$0xff]  }
 0x15d   :  { %3500 = vmatprep.subr.bf16.mxu1 %v4836_v15  ;;  %v4893_v15 = vld [vmem:[#allocation5 + $0x68c] ss:$16 sps:$4 sm:$0xff]  }
 0x15f   :  { %3536 = vmatpush2.bf16.msra.mxu0 %v4837_v38  ;;  %v4894_v38 = vld [vmem:[#allocation5 + $0x408] ss:$16 sps:$4 sm:$0xff]  }
 0x160   :  { %3501 = vmatpush2.bf16.msra.mxu1 %v4834_v17  ;;  %3537 = vmatprep.subr.bf16.mxu0 %v4845_v19  ;;  %v4899_v17 = vld [vmem:[#allocation5 + $0x66c] ss:$16 sps:$4 sm:$0xff]  }
 0x161   :  { %3502 = vmatprep.subr.bf16.mxu1 %v4842_v18  ;;  %v4897_v18 = vld [vmem:[#allocation5 + $0x668] ss:$16 sps:$4 sm:$0xff]   ;;  %v4902_v19 = vld [vmem:[#allocation5 + $0x5ec] ss:$16 sps:$4 sm:$0xff]  }
 0x163   :  { %3538 = vmatpush2.bf16.msra.mxu0 %v4843_v23  ;;  %v4900_v23 = vld [vmem:[#allocation5 + $0x5e8] ss:$16 sps:$4 sm:$0xff]  }
 0x164   :  { %3503 = vmatpush2.bf16.msra.mxu1 %v4840_v20  ;;  %3539 = vmatprep.subr.bf16.mxu0 %v4851_v25  ;;  %v4905_v20 = vld [vmem:[#allocation5 + $0x64c] ss:$16 sps:$4 sm:$0xff]  }
 0x165   :  { %3504 = vmatprep.subr.bf16.mxu1 %v4848_v24  ;;  %v4903_v24 = vld [vmem:[#allocation5 + $0x648] ss:$16 sps:$4 sm:$0xff]   ;;  %v4908_v25 = vld [vmem:[#allocation5 + $0x5cc] ss:$16 sps:$4 sm:$0xff]  }
 0x167   :  { %3540 = vmatpush2.bf16.msra.mxu0 %v4849_v30  ;;  %v4906_v30 = vld [vmem:[#allocation5 + $0x5c8] ss:$16 sps:$4 sm:$0xff]  }
 0x168   :  { %3505 = vmatpush2.bf16.msra.mxu1 %v4846_v29  ;;  %3541 = vmatprep.subr.bf16.mxu0 %v4854_v31  ;;  %v4911_v29 = vld [vmem:[#allocation5 + $0x62c] ss:$16 sps:$4 sm:$0xff]   ;;  %v4909_v31 = vld [vmem:[#allocation5 + $0x628] ss:$16 sps:$4 sm:$0xff]  }
 0x169   :  { %3556 = vmatprep.subr.bf16.mxu1 %v4857_v35  ;;  %v4914_v35 = vld [vmem:[#allocation5 + $0x5ac] ss:$16 sps:$4 sm:$0xff]  }
 0x16b   :  { %3507 = vmatmul.mubr.bf16.vlgmr.msra.gmra.mxu1 %v5288_v9  ;;  %3542 = vmatpush2.bf16.msra.mxu0 %v4852_v36  ;;  %v4873_v9 = vld [vmem:[#allocation5 + $0x6e8] ss:$16 sps:$4 sm:$0xff]   ;;  %v4917_v36 = vld [vmem:[#allocation5 + $0x60c] ss:$16 sps:$4 sm:$0xff]  }
 0x16c   :  { %3557 = vmatpush1.bf16.msra.mxu1 %v4855_v39  ;;  %3543 = vmatprep.subr.bf16.mxu0 %v4860_v40  ;;  %v4912_v39 = vld [vmem:[#allocation5 + $0x5a8] ss:$16 sps:$4 sm:$0xff]  }
 0x16d   :  { %3558 = vmatprep.subr.bf16.mxu1 %v4863_v41  ;;  %3588 = vmatprep.mubr.bf16.mxu1 %v5302_v43  ;;  %v4915_v40 = vld [vmem:[#allocation5 + $0x608] ss:$16 sps:$4 sm:$0xff]   ;;  %v4920_v41 = vld [vmem:[#allocation5 + $0x58c] ss:$16 sps:$4 sm:$0xff]  }
 0x16f   :  { %3544 = vmatpush2.bf16.msra.mxu0 %v4858_v42  ;;  %v4923_v42 = vld [vmem:[#allocation5 + $0x7ec] ss:$16 sps:$4 sm:$0xff]  }
 0x170   :  { %3559 = vmatpush1.bf16.msra.mxu1 %v4861_v45  ;;  %3545 = vmatprep.subr.bf16.mxu0 %v4866_v46  ;;  %v4918_v45 = vld [vmem:[#allocation5 + $0x588] ss:$16 sps:$4 sm:$0xff]  }
 0x171   :  { %3560 = vmatprep.subr.bf16.mxu1 %v4869_v56  ;;  %v4921_v46 = vld [vmem:[#allocation5 + $0x7e8] ss:$16 sps:$4 sm:$0xff]   ;;  %v4926_v56 = vld [vmem:[#allocation5 + $0x56c] ss:$16 sps:$4 sm:$0xff]  }
 0x173   :  { %3546 = vmatpush2.bf16.msra.mxu0 %v4864_v49  ;;  %v4929_v49 = vld [vmem:[#allocation5 + $0x7cc] ss:$16 sps:$4 sm:$0xff]  }
 0x174   :  { %3561 = vmatpush1.bf16.msra.mxu1 %v4867_v50  ;;  %3597 = vmatprep.subr.bf16.mxu0 %v4875_v52  ;;  %v4924_v50 = vld [vmem:[#allocation5 + $0x568] ss:$16 sps:$4 sm:$0xff]   ;;  %v4932_v52 = vld [vmem:[#allocation5 + $0x54c] ss:$16 sps:$4 sm:$0xff]  }
 0x175   :  { %3562 = vmatprep.subr.bf16.mxu1 %v4872_v51  ;;  %v4927_v51 = vld [vmem:[#allocation5 + $0x7c8] ss:$16 sps:$4 sm:$0xff]  }
 0x176   :  { %v3262_v59 = vpop.f32.mrf.mxu0  ;;  %3548 = vmatmul.mubr.bf16.vlgmr.msra.gmra.mxu0 %v5290_v10 }
 0x177   :  { %v3303_v60 = vpop.f32.mrf.mxu1  ;;  %v3263_v43 = vadd.f32 %v3262_v59, %v5376_v26  ;;  %3598 = vmatpush1.bf16.msra.mxu0 %v4873_v9  ;;  %3629 = vmatprep.mubr.bf16.mxu0 %v5304_v44  ;;  %v4882_v26 = vld [vmem:[#allocation5 + $0x448] ss:$16 sps:$4 sm:$0xff]   ;;  %v4896_v44 = vld [vmem:[#allocation5 + $0x40c] ss:$16 sps:$4 sm:$0xff]  }
 0x178   :  { %3563 = vmatpush1.bf16.msra.mxu1 %v4870_v28  ;;  %v3264_v37 = vpop.f32.mrf.mxu0  ;;  %3599 = vmatprep.subr.bf16.mxu0 %v4881_v58  ;;  %v4935_v28 = vld [vmem:[#allocation5 + $0x7ac] ss:$16 sps:$4 sm:$0xff]   ;;  %v4930_v9 = vld [vmem:[#allocation5 + $0x548] ss:$16 sps:$4 sm:$0xff]  }
 0x179   :  { %v3305_v0 = vpop.f32.mrf.mxu1  ;;  %3564 = vmatprep.subr.bf16.mxu1 %v4878_v57  ;;  %v5385_v3 = vadd.f32 %v3303_v60, %v3263_v43  ;;  %v3265_v5 = vadd.f32 %v3264_v37, %v5379_v32  ;;  %v4891_v32 = vld [vmem:[#allocation5 + $0x688] ss:$16 sps:$4 sm:$0xff]   ;;  %v4938_v58 = vld [vmem:[#allocation5 + $0x52c] ss:$16 sps:$4 sm:$0xff]  }
 0x17a   :  { %v3266_v6 = vpop.f32.mrf.mxu0  ;;  %v4933_v57 = vld [vmem:[#allocation5 + $0x7a8] ss:$16 sps:$4 sm:$0xff]   ;;  %v4941_v59 = vld [vmem:[#allocation5 + $0x78c] ss:$16 sps:$4 sm:$0xff]  }
 0x17b   :  { %v3307_v10 = vpop.f32.mrf.mxu1  ;;  %v5389_v55 = vadd.f32 %v3305_v0, %v3265_v5  ;;  %3600 = vmatpush1.bf16.msra.mxu0 %v4879_v62  ;;  %v4936_v60 = vld [vmem:[#allocation5 + $0x528] ss:$16 sps:$4 sm:$0xff]   ;;  %v4947_v62 = vld [vmem:[#allocation5 + $0x76c] ss:$16 sps:$4 sm:$0xff]  }
 0x17c   :  { %3565 = vmatpush1.bf16.msra.mxu1 %v4876_v61  ;;  %v3267_v12 = vpop.f32.mrf.mxu0  ;;  %3601 = vmatprep.subr.bf16.mxu0 %v4887_v2  ;;  %v4939_v43 = vld [vmem:[#allocation5 + $0x788] ss:$16 sps:$4 sm:$0xff]   ;;  %v4944_v61 = vld [vmem:[#allocation5 + $0x50c] ss:$16 sps:$4 sm:$0xff]  }
 0x17d   :  { %v3308_v13 = vpop.f32.mrf.mxu1  ;;  %3566 = vmatprep.subr.bf16.mxu1 %v4884_v1  ;;  %v4942_v37 = vld [vmem:[#allocation5 + $0x508] ss:$16 sps:$4 sm:$0xff]   ;;  %v4950_v1 = vld [vmem:[#allocation5 + $0x74c] ss:$16 sps:$4 sm:$0xff]  }
 0x17e   :  { %v4945_v0 = vld [vmem:[#allocation5 + $0x768] ss:$16 sps:$4 sm:$0xff]   ;;  %v4953_v2 = vld [vmem:[#allocation5 + $0x8ec] ss:$16 sps:$4 sm:$0xff]  }
 0x17f   :  { %3602 = vmatpush1.bf16.msra.mxu0 %v4885_v11  ;;  %v4948_v5 = vld [vmem:[#allocation5 + $0x748] ss:$16 sps:$4 sm:$0xff]   ;;  %v4956_v10 = vld [vmem:[#allocation5 + $0x72c] ss:$16 sps:$4 sm:$0xff]  }
 0x180   :  { %3567 = vmatpush1.bf16.msra.mxu1 %v4882_v26  ;;  %3603 = vmatprep.subr.bf16.mxu0 %v4893_v15  ;;  %v4951_v6 = vld [vmem:[#allocation5 + $0x8e8] ss:$16 sps:$4 sm:$0xff]   ;;  %v4959_v26 = vld [vmem:[#allocation5 + $0x8cc] ss:$16 sps:$4 sm:$0xff]  }
 0x181   :  { %3568 = vmatprep.subr.bf16.mxu1 %v4890_v14  ;;  %v4954_v11 = vld [vmem:[#allocation5 + $0x728] ss:$16 sps:$4 sm:$0xff]   ;;  %v4962_v13 = vld [vmem:[#allocation5 + $0x70c] ss:$16 sps:$4 sm:$0xff]  }
 0x182   :  { %v4957_v12 = vld [vmem:[#allocation5 + $0x8c8] ss:$16 sps:$4 sm:$0xff]   ;;  %v4965_v14 = vld [vmem:[#allocation5 + $0x8ac] ss:$16 sps:$4 sm:$0xff]  }
 0x183   :  { %3604 = vmatpush1.bf16.msra.mxu0 %v4891_v32  ;;  %v4960_v15 = vld [vmem:[#allocation5 + $0x708] ss:$16 sps:$4 sm:$0xff]   ;;  %v4968_v32 = vld [vmem:[#allocation5 + $0x88c] ss:$16 sps:$4 sm:$0xff]  }
 0x184   :  { %3569 = vmatpush1.bf16.msra.mxu1 %v4888_v16  ;;  %3605 = vmatprep.subr.bf16.mxu0 %v4899_v17  ;;  %v4963_v16 = vld [vmem:[#allocation5 + $0x8a8] ss:$16 sps:$4 sm:$0xff]  }
 0x185   :  { %3570 = vmatprep.subr.bf16.mxu1 %v4896_v44  ;;  %v4971_v44 = vld [vmem:[#allocation5 + $0xaec] ss:$16 sps:$4 sm:$0xff]   ;;  %v4969_v17 = vld [vmem:[#allocation5 + $0xae8] ss:$16 sps:$4 sm:$0xff]  }
 0x187   :  { %3606 = vmatpush1.bf16.msra.mxu0 %v4897_v18  ;;  %v4977_v18 = vld [vmem:[#allocation5 + $0xacc] ss:$16 sps:$4 sm:$0xff]  }
 0x188   :  { %3571 = vmatpush1.bf16.msra.mxu1 %v4894_v38  ;;  %3607 = vmatprep.subr.bf16.mxu0 %v4905_v20  ;;  %v4974_v38 = vld [vmem:[#allocation5 + $0x86c] ss:$16 sps:$4 sm:$0xff]  }
 0x189   :  { %3572 = vmatprep.subr.bf16.mxu1 %v4902_v19 }
 0x18b   :  { %3608 = vmatpush1.bf16.msra.mxu0 %v4903_v24  ;;  %v4975_v24 = vld [vmem:[#allocation5 + $0xac8] ss:$16 sps:$4 sm:$0xff]  }
 0x18c   :  { %3573 = vmatpush2.bf16.msra.mxu1 %v4900_v23  ;;  %3609 = vmatprep.subr.bf16.mxu0 %v4911_v29  ;;  %v4972_v23 = vld [vmem:[#allocation5 + $0x868] ss:$16 sps:$4 sm:$0xff]  }
 0x18d   :  { %3574 = vmatprep.subr.bf16.mxu1 %v4908_v25 }
 0x18f   :  { %3610 = vmatpush1.bf16.msra.mxu0 %v4909_v31  ;;  %v4983_v31 = vld [vmem:[#allocation5 + $0xaac] ss:$16 sps:$4 sm:$0xff]  }
 0x190   :  { %3575 = vmatpush2.bf16.msra.mxu1 %v4906_v30  ;;  %3611 = vmatprep.subr.bf16.mxu0 %v4917_v36  ;;  %v4980_v30 = vld [vmem:[#allocation5 + $0x84c] ss:$16 sps:$4 sm:$0xff]  }
 0x191   :  { %3576 = vmatprep.subr.bf16.mxu1 %v4914_v35 }
 0x193   :  { %3612 = vmatpush1.bf16.msra.mxu0 %v4915_v40 }
 0x194   :  { %3577 = vmatpush2.bf16.msra.mxu1 %v4912_v39  ;;  %3613 = vmatprep.subr.bf16.mxu0 %v4923_v42 }
 0x195   :  { %3578 = vmatprep.subr.bf16.mxu1 %v4920_v41  ;;  %v4981_v41 = vld [vmem:[#allocation5 + $0xaa8] ss:$16 sps:$4 sm:$0xff]  }
 0x197   :  { %3614 = vmatpush2.bf16.msra.mxu0 %v4921_v46  ;;  %v4986_v46 = vld [vmem:[#allocation5 + $0x82c] ss:$16 sps:$4 sm:$0xff]  }
 0x198   :  { %3579 = vmatpush2.bf16.msra.mxu1 %v4918_v45  ;;  %3615 = vmatprep.subr.bf16.mxu0 %v4929_v49  ;;  %v4984_v49 = vld [vmem:[#allocation5 + $0x828] ss:$16 sps:$4 sm:$0xff]  }
 0x199   :  { %3580 = vmatprep.subr.bf16.mxu1 %v4926_v56  ;;  %v4989_v56 = vld [vmem:[#allocation5 + $0xa8c] ss:$16 sps:$4 sm:$0xff]  }
 0x19b   :  { %3616 = vmatpush2.bf16.msra.mxu0 %v4927_v51  ;;  %v4990_v51 = vld [vmem:[#allocation5 + $0x808] ss:$16 sps:$4 sm:$0xff]  }
 0x19c   :  { %3581 = vmatpush2.bf16.msra.mxu1 %v4924_v50  ;;  %3617 = vmatprep.subr.bf16.mxu0 %v4935_v28  ;;  %v4995_v50 = vld [vmem:[#allocation5 + $0xa6c] ss:$16 sps:$4 sm:$0xff]  }
 0x19d   :  { %3582 = vmatprep.subr.bf16.mxu1 %v4932_v52  ;;  %v4993_v52 = vld [vmem:[#allocation5 + $0xa68] ss:$16 sps:$4 sm:$0xff]   ;;  %v4998_v28 = vld [vmem:[#allocation5 + $0x9ec] ss:$16 sps:$4 sm:$0xff]  }
 0x19f   :  { %3618 = vmatpush2.bf16.msra.mxu0 %v4933_v57  ;;  %v4996_v57 = vld [vmem:[#allocation5 + $0x9e8] ss:$16 sps:$4 sm:$0xff]  }
 0x1a0   :  { %3583 = vmatpush2.bf16.msra.mxu1 %v4930_v9  ;;  %3619 = vmatprep.subr.bf16.mxu0 %v4941_v59  ;;  %v5001_v9 = vld [vmem:[#allocation5 + $0xa4c] ss:$16 sps:$4 sm:$0xff]  }
 0x1a1   :  { %3584 = vmatprep.subr.bf16.mxu1 %v4938_v58  ;;  %v4999_v58 = vld [vmem:[#allocation5 + $0xa48] ss:$16 sps:$4 sm:$0xff]   ;;  %v5004_v59 = vld [vmem:[#allocation5 + $0x9cc] ss:$16 sps:$4 sm:$0xff]  }
 0x1a3   :  { %3620 = vmatpush2.bf16.msra.mxu0 %v4939_v43  ;;  %v5002_v43 = vld [vmem:[#allocation5 + $0x9c8] ss:$16 sps:$4 sm:$0xff]  }
 0x1a4   :  { %3585 = vmatpush2.bf16.msra.mxu1 %v4936_v60  ;;  %3621 = vmatprep.subr.bf16.mxu0 %v4947_v62  ;;  %v5007_v60 = vld [vmem:[#allocation5 + $0xa2c] ss:$16 sps:$4 sm:$0xff]  }
 0x1a5   :  { %3586 = vmatprep.subr.bf16.mxu1 %v4944_v61  ;;  %v5005_v61 = vld [vmem:[#allocation5 + $0xa28] ss:$16 sps:$4 sm:$0xff]   ;;  %v5010_v62 = vld [vmem:[#allocation5 + $0x9ac] ss:$16 sps:$4 sm:$0xff]  }
 0x1a7   :  { %3622 = vmatpush2.bf16.msra.mxu0 %v4945_v0  ;;  %v5008_v0 = vld [vmem:[#allocation5 + $0x9a8] ss:$16 sps:$4 sm:$0xff]  }
 0x1a8   :  { %3587 = vmatpush2.bf16.msra.mxu1 %v4942_v37  ;;  %3623 = vmatprep.subr.bf16.mxu0 %v4950_v1  ;;  %v5013_v37 = vld [vmem:[#allocation5 + $0xa0c] ss:$16 sps:$4 sm:$0xff]   ;;  %v5011_v1 = vld [vmem:[#allocation5 + $0xa08] ss:$16 sps:$4 sm:$0xff]  }
 0x1a9   :  { %3638 = vmatprep.subr.bf16.mxu1 %v4953_v2  ;;  %v5016_v2 = vld [vmem:[#allocation5 + $0x98c] ss:$16 sps:$4 sm:$0xff]  }
 0x1ab   :  { %3589 = vmatmul.mubr.bf16.vlgmr.msra.gmra.mxu1 %v5310_v21  ;;  %3624 = vmatpush2.bf16.msra.mxu0 %v4948_v5  ;;  %v4966_v21 = vld [vmem:[#allocation5 + $0x888] ss:$16 sps:$4 sm:$0xff]   ;;  %v5019_v5 = vld [vmem:[#allocation5 + $0xbec] ss:$16 sps:$4 sm:$0xff]  }
 0x1ac   :  { %3639 = vmatpush1.bf16.msra.mxu1 %v4951_v6  ;;  %3625 = vmatprep.subr.bf16.mxu0 %v4956_v10  ;;  %v5014_v6 = vld [vmem:[#allocation5 + $0x988] ss:$16 sps:$4 sm:$0xff]  }
 0x1ad   :  { %3640 = vmatprep.subr.bf16.mxu1 %v4959_v26  ;;  %3670 = vmatprep.mubr.bf16.mxu1 %v5326_v33  ;;  %v5017_v10 = vld [vmem:[#allocation5 + $0xbe8] ss:$16 sps:$4 sm:$0xff]   ;;  %v5022_v26 = vld [vmem:[#allocation5 + $0x96c] ss:$16 sps:$4 sm:$0xff]  }
 0x1af   :  { %3626 = vmatpush2.bf16.msra.mxu0 %v4954_v11  ;;  %v5025_v11 = vld [vmem:[#allocation5 + $0xbcc] ss:$16 sps:$4 sm:$0xff]  }
 0x1b0   :  { %3641 = vmatpush1.bf16.msra.mxu1 %v4957_v12  ;;  %3627 = vmatprep.subr.bf16.mxu0 %v4962_v13  ;;  %v5020_v12 = vld [vmem:[#allocation5 + $0x968] ss:$16 sps:$4 sm:$0xff]  }
 0x1b1   :  { %3642 = vmatprep.subr.bf16.mxu1 %v4965_v14  ;;  %v5023_v13 = vld [vmem:[#allocation5 + $0xbc8] ss:$16 sps:$4 sm:$0xff]   ;;  %v5028_v14 = vld [vmem:[#allocation5 + $0x94c] ss:$16 sps:$4 sm:$0xff]  }
 0x1b3   :  { %3628 = vmatpush2.bf16.msra.mxu0 %v4960_v15  ;;  %v5031_v15 = vld [vmem:[#allocation5 + $0xbac] ss:$16 sps:$4 sm:$0xff]  }
 0x1b4   :  { %3643 = vmatpush1.bf16.msra.mxu1 %v4963_v16  ;;  %3679 = vmatprep.subr.bf16.mxu0 %v4971_v44  ;;  %v5026_v16 = vld [vmem:[#allocation5 + $0x948] ss:$16 sps:$4 sm:$0xff]   ;;  %v5034_v44 = vld [vmem:[#allocation5 + $0x92c] ss:$16 sps:$4 sm:$0xff]  }
 0x1b5   :  { %3644 = vmatprep.subr.bf16.mxu1 %v4968_v32  ;;  %v5029_v32 = vld [vmem:[#allocation5 + $0xba8] ss:$16 sps:$4 sm:$0xff]  }
 0x1b6   :  { %v3344_v19 = vpop.f32.mrf.mxu0  ;;  %3630 = vmatmul.mubr.bf16.vlgmr.msra.gmra.mxu0 %v5314_v22 }
 0x1b7   :  { %v3385_v20 = vpop.f32.mrf.mxu1  ;;  %v3345_v33 = vadd.f32 %v3344_v19, %v5385_v3  ;;  %3680 = vmatpush1.bf16.msra.mxu0 %v4969_v17  ;;  %3711 = vmatprep.mubr.bf16.mxu0 %v5328_v34  ;;  %v4978_v3 = vld [vmem:[#allocation5 + $0x848] ss:$16 sps:$4 sm:$0xff]   ;;  %v4992_v34 = vld [vmem:[#allocation5 + $0x80c] ss:$16 sps:$4 sm:$0xff]  }
 0x1b8   :  { %3645 = vmatpush1.bf16.msra.mxu1 %v4966_v21  ;;  %v3346_v25 = vpop.f32.mrf.mxu0  ;;  %3681 = vmatprep.subr.bf16.mxu0 %v4977_v18  ;;  %v5037_v21 = vld [vmem:[#allocation5 + $0xb8c] ss:$16 sps:$4 sm:$0xff]   ;;  %v5032_v17 = vld [vmem:[#allocation5 + $0x928] ss:$16 sps:$4 sm:$0xff]  }
 0x1b9   :  { %v3387_v29 = vpop.f32.mrf.mxu1  ;;  %3646 = vmatprep.subr.bf16.mxu1 %v4974_v38  ;;  %v5395_v35 = vadd.f32 %v3385_v20, %v3345_v33  ;;  %v3347_v36 = vadd.f32 %v3346_v25, %v5389_v55  ;;  %v4987_v55 = vld [vmem:[#allocation5 + $0xa88] ss:$16 sps:$4 sm:$0xff]   ;;  %v5040_v18 = vld [vmem:[#allocation5 + $0x90c] ss:$16 sps:$4 sm:$0xff]  }
 0x1ba   :  { %v3348_v39 = vpop.f32.mrf.mxu0  ;;  %v5035_v38 = vld [vmem:[#allocation5 + $0xb88] ss:$16 sps:$4 sm:$0xff]   ;;  %v5043_v19 = vld [vmem:[#allocation5 + $0xb6c] ss:$16 sps:$4 sm:$0xff]  }
 0x1bb   :  { %v3389_v22 = vpop.f32.mrf.mxu1  ;;  %v5399_v40 = vadd.f32 %v3387_v29, %v3347_v36  ;;  %3682 = vmatpush1.bf16.msra.mxu0 %v4975_v24  ;;  %v5038_v20 = vld [vmem:[#allocation5 + $0x908] ss:$16 sps:$4 sm:$0xff]   ;;  %v5049_v24 = vld [vmem:[#allocation5 + $0xcec] ss:$16 sps:$4 sm:$0xff]  }
 0x1bc   :  { %3647 = vmatpush1.bf16.msra.mxu1 %v4972_v23  ;;  %v3349_v42 = vpop.f32.mrf.mxu0  ;;  %3683 = vmatprep.subr.bf16.mxu0 %v4983_v31  ;;  %v5041_v33 = vld [vmem:[#allocation5 + $0xb68] ss:$16 sps:$4 sm:$0xff]   ;;  %v5046_v23 = vld [vmem:[#allocation5 + $0xb4c] ss:$16 sps:$4 sm:$0xff]  }
 0x1bd   :  { %v3390_v45 = vpop.f32.mrf.mxu1  ;;  %3648 = vmatprep.subr.bf16.mxu1 %v4980_v30  ;;  %v5044_v25 = vld [vmem:[#allocation5 + $0xb48] ss:$16 sps:$4 sm:$0xff]   ;;  %v5052_v30 = vld [vmem:[#allocation5 + $0xb2c] ss:$16 sps:$4 sm:$0xff]  }
 0x1be   :  { %v5047_v29 = vld [vmem:[#allocation5 + $0xce8] ss:$16 sps:$4 sm:$0xff]   ;;  %v5055_v31 = vld [vmem:[#allocation5 + $0xccc] ss:$16 sps:$4 sm:$0xff]  }
 0x1bf   :  { %3684 = vmatpush1.bf16.msra.mxu0 %v4981_v41  ;;  %v5050_v39 = vld [vmem:[#allocation5 + $0xb28] ss:$16 sps:$4 sm:$0xff]   ;;  %v5058_v41 = vld [vmem:[#allocation5 + $0xb0c] ss:$16 sps:$4 sm:$0xff]  }
 0x1c0   :  { %3649 = vmatpush1.bf16.msra.mxu1 %v4978_v3  ;;  %3685 = vmatprep.subr.bf16.mxu0 %v4989_v56  ;;  %v5053_v22 = vld [vmem:[#allocation5 + $0xcc8] ss:$16 sps:$4 sm:$0xff]   ;;  %v5061_v42 = vld [vmem:[#allocation5 + $0xcac] ss:$16 sps:$4 sm:$0xff]  }
 0x1c1   :  { %3650 = vmatprep.subr.bf16.mxu1 %v4986_v46  ;;  %v5056_v46 = vld [vmem:[#allocation5 + $0xb08] ss:$16 sps:$4 sm:$0xff]  }
 0x1c2   :  { %v5059_v56 = vld [vmem:[#allocation5 + $0xca8] ss:$16 sps:$4 sm:$0xff]  }
 0x1c3   :  { %3686 = vmatpush1.bf16.msra.mxu0 %v4987_v55  ;;  %v5067_v55 = vld [vmem:[#allocation5 + $0xeec] ss:$16 sps:$4 sm:$0xff]  }
 0x1c4   :  { %3651 = vmatpush1.bf16.msra.mxu1 %v4984_v49  ;;  %3687 = vmatprep.subr.bf16.mxu0 %v4995_v50  ;;  %v5065_v50 = vld [vmem:[#allocation5 + $0xee8] ss:$16 sps:$4 sm:$0xff]  }
 0x1c5   :  { %3652 = vmatprep.subr.bf16.mxu1 %v4992_v34  ;;  %v5062_v34 = vld [vmem:[#allocation5 + $0xc88] ss:$16 sps:$4 sm:$0xff]  }
 0x1c7   :  { %3688 = vmatpush1.bf16.msra.mxu0 %v4993_v52  ;;  %v5073_v52 = vld [vmem:[#allocation5 + $0xecc] ss:$16 sps:$4 sm:$0xff]  }
 0x1c8   :  { %3653 = vmatpush1.bf16.msra.mxu1 %v4990_v51  ;;  %3689 = vmatprep.subr.bf16.mxu0 %v5001_v9  ;;  %v5070_v51 = vld [vmem:[#allocation5 + $0xc6c] ss:$16 sps:$4 sm:$0xff]  }
 0x1c9   :  { %3654 = vmatprep.subr.bf16.mxu1 %v4998_v28 }
 0x1cb   :  { %3690 = vmatpush1.bf16.msra.mxu0 %v4999_v58  ;;  %v5071_v58 = vld [vmem:[#allocation5 + $0xec8] ss:$16 sps:$4 sm:$0xff]  }
 0x1cc   :  { %3655 = vmatpush2.bf16.msra.mxu1 %v4996_v57  ;;  %3691 = vmatprep.subr.bf16.mxu0 %v5007_v60  ;;  %v5068_v57 = vld [vmem:[#allocation5 + $0xc68] ss:$16 sps:$4 sm:$0xff]   ;;  %v5076_v60 = vld [vmem:[#allocation5 + $0xc4c] ss:$16 sps:$4 sm:$0xff]  }
 0x1cd   :  { %3656 = vmatprep.subr.bf16.mxu1 %v5004_v59 }
 0x1cf   :  { %3692 = vmatpush1.bf16.msra.mxu0 %v5005_v61 }
 0x1d0   :  { %3657 = vmatpush2.bf16.msra.mxu1 %v5002_v43  ;;  %3693 = vmatprep.subr.bf16.mxu0 %v5013_v37  ;;  %v5079_v43 = vld [vmem:[#allocation5 + $0xeac] ss:$16 sps:$4 sm:$0xff]   ;;  %v5074_v37 = vld [vmem:[#allocation5 + $0xc48] ss:$16 sps:$4 sm:$0xff]  }
 0x1d1   :  { %3658 = vmatprep.subr.bf16.mxu1 %v5010_v62 }
 0x1d3   :  { %3694 = vmatpush1.bf16.msra.mxu0 %v5011_v1 }
 0x1d4   :  { %3659 = vmatpush2.bf16.msra.mxu1 %v5008_v0  ;;  %3695 = vmatprep.subr.bf16.mxu0 %v5019_v5 }
 0x1d5   :  { %3660 = vmatprep.subr.bf16.mxu1 %v5016_v2  ;;  %v5077_v2 = vld [vmem:[#allocation5 + $0xea8] ss:$16 sps:$4 sm:$0xff]  }
 0x1d7   :  { %3696 = vmatpush2.bf16.msra.mxu0 %v5017_v10 }
 0x1d8   :  { %3661 = vmatpush2.bf16.msra.mxu1 %v5014_v6  ;;  %3697 = vmatprep.subr.bf16.mxu0 %v5025_v11  ;;  %v5085_v6 = vld [vmem:[#allocation5 + $0xe8c] ss:$16 sps:$4 sm:$0xff]  }
 0x1d9   :  { %3662 = vmatprep.subr.bf16.mxu1 %v5022_v26 }
 0x1db   :  { %3698 = vmatpush2.bf16.msra.mxu0 %v5023_v13  ;;  %v5083_v13 = vld [vmem:[#allocation5 + $0xe88] ss:$16 sps:$4 sm:$0xff]  }
 0x1dc   :  { %3663 = vmatpush2.bf16.msra.mxu1 %v5020_v12  ;;  %3699 = vmatprep.subr.bf16.mxu0 %v5031_v15  ;;  %v5080_v12 = vld [vmem:[#allocation5 + $0xc28] ss:$16 sps:$4 sm:$0xff]   ;;  %v5091_v15 = vld [vmem:[#allocation5 + $0xe6c] ss:$16 sps:$4 sm:$0xff]  }
 0x1dd   :  { %3664 = vmatprep.subr.bf16.mxu1 %v5028_v14  ;;  %v5088_v14 = vld [vmem:[#allocation5 + $0xc0c] ss:$16 sps:$4 sm:$0xff]  }
 0x1df   :  { %3700 = vmatpush2.bf16.msra.mxu0 %v5029_v32 }
 0x1e0   :  { %3665 = vmatpush2.bf16.msra.mxu1 %v5026_v16  ;;  %3701 = vmatprep.subr.bf16.mxu0 %v5037_v21  ;;  %v5089_v21 = vld [vmem:[#allocation5 + $0xe68] ss:$16 sps:$4 sm:$0xff]  }
 0x1e1   :  { %3666 = vmatprep.subr.bf16.mxu1 %v5034_v44  ;;  %v5086_v44 = vld [vmem:[#allocation5 + $0xc08] ss:$16 sps:$4 sm:$0xff]  }
 0x1e3   :  { %3702 = vmatpush2.bf16.msra.mxu0 %v5035_v38  ;;  %v5094_v38 = vld [vmem:[#allocation5 + $0xdec] ss:$16 sps:$4 sm:$0xff]  }
 0x1e4   :  { %3667 = vmatpush2.bf16.msra.mxu1 %v5032_v17  ;;  %3703 = vmatprep.subr.bf16.mxu0 %v5043_v19  ;;  %v5092_v19 = vld [vmem:[#allocation5 + $0xde8] ss:$16 sps:$4 sm:$0xff]  }
 0x1e5   :  { %3668 = vmatprep.subr.bf16.mxu1 %v5040_v18  ;;  %v5097_v18 = vld [vmem:[#allocation5 + $0xe4c] ss:$16 sps:$4 sm:$0xff]  }
 0x1e7   :  { %3704 = vmatpush2.bf16.msra.mxu0 %v5041_v33  ;;  %v5100_v33 = vld [vmem:[#allocation5 + $0xdcc] ss:$16 sps:$4 sm:$0xff]  }
 0x1e8   :  { %3669 = vmatpush2.bf16.msra.mxu1 %v5038_v20  ;;  %3705 = vmatprep.subr.bf16.mxu0 %v5046_v23  ;;  %v5095_v20 = vld [vmem:[#allocation5 + $0xe48] ss:$16 sps:$4 sm:$0xff]   ;;  %v5103_v23 = vld [vmem:[#allocation5 + $0xe2c] ss:$16 sps:$4 sm:$0xff]  }
 0x1e9   :  { %3720 = vmatprep.subr.bf16.mxu1 %v5049_v24  ;;  %v5098_v24 = vld [vmem:[#allocation5 + $0xdc8] ss:$16 sps:$4 sm:$0xff]  }
 0x1eb   :  { %v3467_v36 = vpop.f32.mrf.mxu1  ;;  %3671 = vmatmul.mubr.bf16.vlgmr.msra.gmra.mxu1 %v5342_v47  ;;  %3706 = vmatpush2.bf16.msra.mxu0 %v5044_v25  ;;  %v5064_v47 = vld [vmem:[#allocation5 + $0xc8c] ss:$16 sps:$4 sm:$0xff]   ;;  %v5101_v25 = vld [vmem:[#allocation5 + $0xe28] ss:$16 sps:$4 sm:$0xff]  }
 0x1ec   :  { %3721 = vmatpush1.bf16.msra.mxu1 %v5047_v29  ;;  %3707 = vmatprep.subr.bf16.mxu0 %v5052_v30  ;;  %v5106_v29 = vld [vmem:[#allocation5 + $0xdac] ss:$16 sps:$4 sm:$0xff]  }
 0x1ed   :  { %v3469_v3 = vpop.f32.mrf.mxu1  ;;  %3722 = vmatprep.subr.bf16.mxu1 %v5055_v31  ;;  %3752 = vmatprep.mubr.bf16.mxu1 %v5350_v54  ;;  %v5404_v54 = vld [vmem:[#allocation8] sm:$0xf]  ;;  %v5109_v30 = vld [vmem:[#allocation5 + $0xe0c] ss:$16 sps:$4 sm:$0xff]   ;;  %v5104_v31 = vld [vmem:[#allocation5 + $0xda8] ss:$16 sps:$4 sm:$0xff]  }
 0x1ee   :  { %v3823_v5 = vrot.slane %v5404_v54, %v628_v7 }
 0x1ef   :  { %v3471_v45 = vpop.f32.mrf.mxu1  ;;  %3708 = vmatpush2.bf16.msra.mxu0 %v5050_v39  ;;  %v5112_v39 = vld [vmem:[#allocation5 + $0xd8c] ss:$16 sps:$4 sm:$0xff]  }
 0x1f0   :  { %3723 = vmatpush1.bf16.msra.mxu1 %v5053_v22  ;;  %3709 = vmatprep.subr.bf16.mxu0 %v5058_v41  ;;  %v5115_v22 = vld [vmem:[#allocation5 + $0xf8c] ss:$16 sps:$4 sm:$0xff]   ;;  %v5113_v41 = vld [vmem:[#allocation5 + $0xf88] ss:$16 sps:$4 sm:$0xff]  }
 0x1f1   :  { %v3472_v49 = vpop.f32.mrf.mxu1  ;;  %3724 = vmatprep.subr.bf16.mxu1 %v5061_v42  ;;  %v5118_v42 = vld [vmem:[#allocation5 + $0xd6c] ss:$16 sps:$4 sm:$0xff]  }
 0x1f2   :  { %v5121_v45 = vld [vmem:[#allocation5 + $0xf6c] ss:$16 sps:$4 sm:$0xff]  }
 0x1f3   :  { %3710 = vmatpush2.bf16.msra.mxu0 %v5056_v46  ;;  %v5116_v46 = vld [vmem:[#allocation5 + $0xd68] ss:$16 sps:$4 sm:$0xff]   ;;  %v5124_v49 = vld [vmem:[#allocation5 + $0xd4c] ss:$16 sps:$4 sm:$0xff]  }
 0x1f4   :  { %3725 = vmatpush1.bf16.msra.mxu1 %v5059_v56  ;;  %3761 = vmatprep.subr.bf16.mxu0 %v5067_v55  ;;  %v5119_v56 = vld [vmem:[#allocation5 + $0xf68] ss:$16 sps:$4 sm:$0xff]  }
 0x1f5   :  { %3726 = vmatprep.subr.bf16.mxu1 %v5064_v47  ;;  %v5127_v47 = vld [vmem:[#allocation5 + $0xf4c] ss:$16 sps:$4 sm:$0xff]   ;;  %v5122_v55 = vld [vmem:[#allocation5 + $0xd48] ss:$16 sps:$4 sm:$0xff]  }
 0x1f6   :  { %v3426_v28 = vpop.f32.mrf.mxu0  ;;  %3712 = vmatmul.mubr.bf16.vlgmr.msra.gmra.mxu0 %v5346_v48  ;;  %v3819_v48 = vrot.slane %v5404_v54, %v624_v4 }
 0x1f7   :  { %v3427_v9 = vadd.f32 %v3426_v28, %v5395_v35  ;;  %3762 = vmatpush1.bf16.msra.mxu0 %v5065_v50  ;;  %4374 = vmatprep.mubr.msk.bf16.mxu0 %vm3142_vm0, %v5348_v53  ;;  %v5082_v53 = vld [vmem:[#allocation5 + $0xc2c] ss:$16 sps:$4 sm:$0xff]   ;;  %v5131_v28 = vld [vmem:[#allocation5 + $0xf28] ss:$16 sps:$4 sm:$0xff]  }
 0x1f8   :  { %3727 = vmatpush1.bf16.msra.mxu1 %v5062_v34  ;;  %v3428_v59 = vpop.f32.mrf.mxu0  ;;  %3763 = vmatprep.subr.bf16.mxu0 %v5073_v52  ;;  %v5125_v34 = vld [vmem:[#allocation5 + $0xf48] ss:$16 sps:$4 sm:$0xff]   ;;  %v5130_v50 = vld [vmem:[#allocation5 + $0xd2c] ss:$16 sps:$4 sm:$0xff]  }
 0x1f9   :  { %3728 = vmatprep.subr.bf16.mxu1 %v5070_v51  ;;  %v3468_v61 = vadd.f32 %v3467_v36, %v3427_v9  ;;  %v3429_v62 = vadd.f32 %v3428_v59, %v5399_v40  ;;  %v5107_v36 = vld [vmem:[#allocation5 + $0xe08] ss:$16 sps:$4 sm:$0xff]   ;;  %v5133_v51 = vld [vmem:[#allocation5 + $0xf2c] ss:$16 sps:$4 sm:$0xff]  }
 0x1fa   :  { %v3430_v35 = vpop.f32.mrf.mxu0  ;;  %v5128_v52 = vld [vmem:[#allocation5 + $0xd28] ss:$16 sps:$4 sm:$0xff]   ;;  %v5136_v9 = vld [vmem:[#allocation5 + $0xd0c] ss:$16 sps:$4 sm:$0xff]  }
 0x1fb   :  { %vm3802_vm1 = vcmp.gt.f32.partialorder %v3468_v61, 0.0  ;;  %v3806_v0 = vmul.f32 0.1, %v3468_v61  ;;  %v3470_v1 = vadd.f32 %v3469_v3, %v3429_v62  ;;  %3764 = vmatpush1.bf16.msra.mxu0 %v5071_v58  ;;  %v5110_v3 = vld [vmem:[#allocation5 + $0xd88] ss:$16 sps:$4 sm:$0xff]  }
 0x1fc   :  { %3729 = vmatpush1.bf16.msra.mxu1 %v5068_v57  ;;  %v3431_v40 = vpop.f32.mrf.mxu0  ;;  %3765 = vmatprep.subr.bf16.mxu0 %v5079_v43  ;;  %v5139_v57 = vld [vmem:[#allocation5 + $0xf0c] ss:$16 sps:$4 sm:$0xff]   ;;  %v5134_v58 = vld [vmem:[#allocation5 + $0xd08] ss:$16 sps:$4 sm:$0xff]  }
 0x1fd   :  { %3730 = vmatprep.subr.bf16.mxu1 %v5076_v60  ;;  %v3810_v10 = vsel %vm3802_vm1, %v3468_v61, %v3806_v0  ;;  %vm3803_vm2 = vcmp.gt.f32.partialorder %v3470_v1, 0.0  ;;  %v3807_v4 = vmul.f32 0.1, %v3470_v1  ;;  %v5137_v59 = vld [vmem:[#allocation5 + $0xf08] ss:$16 sps:$4 sm:$0xff]   ;;  %v632_v61 = vsub.s32 2, %v5362_v63 }
 0x1fe   :  { %v3836_v26 = vmul.f32 %v3819_v48, %v3810_v10  ;;  %v636_v48 = vsub.s32 3, %v5362_v63 }
 0x1ff   :  { %v3811_v11 = vsel %vm3803_vm2, %v3470_v1, %v3807_v4  ;;  %3766 = vmatpush1.bf16.msra.mxu0 %v5077_v2 }
 0x200   :  { %3731 = vmatpush1.bf16.msra.mxu1 %v5074_v37  ;;  %3767 = vmatprep.subr.bf16.mxu0 %v5085_v6  ;;  %v3837_v7 = vmul.f32 %v3823_v5, %v3811_v11  ;;  %v3841_v16 = vsel %vm3840_vm3, %v3836_v26, 0.0  ;;  %v5144_v37 = vld [vmem:[#allocation7] sm:$0xf] }
 0x201   :  { %3732 = vmatprep.subr.bf16.mxu1 %v5082_v53  ;;  %v633_v0 = vrot.slane %v5144_v37, %v632_v61  ;;  %v637_v1 = vrot.slane %v5144_v37, %v636_v48 }
 0x202   :  { %v3842_v32 = vsel %vm3840_vm3, %v3837_v7, 0.0 }
 0x203   :  { %3768 = vmatpush1.bf16.msra.mxu0 %v5083_v13  ;;  %v5418_v17 = vadd.f32 %v3842_v32, %v3841_v16 }
 0x204   :  { %3733 = vmatpush1.bf16.msra.mxu1 %v5080_v12  ;;  %3769 = vmatprep.subr.bf16.mxu0 %v5091_v15 }
 0x205   :  { %3734 = vmatprep.subr.bf16.mxu1 %v5088_v14 }
 0x207   :  { %3770 = vmatpush1.bf16.msra.mxu0 %v5089_v21 }
 0x208   :  { %3735 = vmatpush1.bf16.msra.mxu1 %v5086_v44  ;;  %3771 = vmatprep.subr.bf16.mxu0 %v5097_v18 }
 0x209   :  { %3736 = vmatprep.subr.bf16.mxu1 %v5094_v38 }
 0x20b   :  { %3772 = vmatpush1.bf16.msra.mxu0 %v5095_v20 }
 0x20c   :  { %3737 = vmatpush2.bf16.msra.mxu1 %v5092_v19  ;;  %3773 = vmatprep.subr.bf16.mxu0 %v5103_v23 }
 0x20d   :  { %3738 = vmatprep.subr.bf16.mxu1 %v5100_v33 }
 0x20f   :  { %3774 = vmatpush1.bf16.msra.mxu0 %v5101_v25 }
 0x210   :  { %3739 = vmatpush2.bf16.msra.mxu1 %v5098_v24  ;;  %3775 = vmatprep.subr.bf16.mxu0 %v5109_v30 }
 0x211   :  { %3740 = vmatprep.subr.bf16.mxu1 %v5106_v29 }
 0x213   :  { %3776 = vmatpush1.bf16.msra.mxu0 %v5107_v36 }
 0x214   :  { %3741 = vmatpush2.bf16.msra.mxu1 %v5104_v31  ;;  %3783 = vmatprep.subr.bf16.mxu0 %v5115_v22 }
 0x215   :  { %3742 = vmatprep.subr.bf16.mxu1 %v5112_v39 }
 0x217   :  { %3784 = vmatpush2.bf16.msra.mxu0 %v5113_v41 }
 0x218   :  { %3743 = vmatpush2.bf16.msra.mxu1 %v5110_v3  ;;  %3785 = vmatprep.subr.bf16.mxu0 %v5121_v45 }
 0x219   :  { %3744 = vmatprep.subr.bf16.mxu1 %v5118_v42 }
 0x21b   :  { %3786 = vmatpush2.bf16.msra.mxu0 %v5119_v56 }
 0x21c   :  { %3745 = vmatpush2.bf16.msra.mxu1 %v5116_v46  ;;  %3787 = vmatprep.subr.bf16.mxu0 %v5127_v47  ;;  %v3827_v46 = vrot.slane %v5404_v54, %v632_v61 }
 0x21d   :  { %3746 = vmatprep.subr.bf16.mxu1 %v5124_v49 }
 0x21f   :  { %3788 = vmatpush2.bf16.msra.mxu0 %v5125_v34 }
 0x220   :  { %3747 = vmatpush2.bf16.msra.mxu1 %v5122_v55  ;;  %3789 = vmatprep.subr.bf16.mxu0 %v5133_v51  ;;  %v3831_v51 = vrot.slane %v5404_v54, %v636_v48 }
 0x221   :  { %3748 = vmatprep.subr.bf16.mxu1 %v5130_v50 }
 0x223   :  { %3790 = vmatpush2.bf16.msra.mxu0 %v5131_v28 }
 0x224   :  { %3749 = vmatpush2.bf16.msra.mxu1 %v5128_v52  ;;  %3791 = vmatprep.subr.bf16.mxu0 %v5139_v57 }
 0x225   :  { %3750 = vmatprep.subr.bf16.mxu1 %v5136_v9 }
 0x227   :  { %3792 = vmatpush2.bf16.msra.mxu0 %v5137_v59 }
 0x228   :  { %3751 = vmatpush2.bf16.msra.mxu1 %v5134_v58 }
 0x22a   :  { %3794 = vmatmul.mubr.bf16.vlgmr.msra.gmra.mxu0 %v5359_v27 }
 0x22b   :  { %v3508_v60 = vpop.f32.mrf.mxu1  ;;  %3753 = vmatmul.mubr.bf16.vlgmr.msra.gmra.mxu1 %v5369_v8 }
 0x22c   :  { %v3509_v2 = vadd.f32 %v3508_v60, %v633_v0 }
 0x22d   :  { %v3510_v43 = vpop.f32.mrf.mxu1 }
 0x22e   :  { %v3511_v40 = vadd.f32 %v3510_v43, %v637_v1 }
 0x22f   :  { %v3512_v62 = vpop.f32.mrf.mxu1 }
 0x230   :  { %v4375_v62 = vld [vmem:[#allocation2] ss:$0 sm:$0xff] }
 0x231   :  { %v3513_v35 = vpop.f32.mrf.mxu1 }
 0x236   :  { %v3549_v5 = vpop.f32.mrf.mxu0 }
 0x237   :  { %v3550_v53 = vadd.f32 %v3549_v5, %v3509_v2 }
 0x238   :  { %v3551_v6 = vpop.f32.mrf.mxu0 }
 0x239   :  { %v3552_v10 = vadd.f32 %v3551_v6, %v3511_v40 }
 0x23a   :  { %v3553_v4 = vpop.f32.mrf.mxu0 }
 0x23c   :  { %v3554_v8 = vpop.f32.mrf.mxu0 }
 0x26b   :  { %v3590_v26 = vpop.f32.mrf.mxu1 }
 0x26c   :  { %v3591_v27 = vadd.f32 %v3590_v26, %v3550_v53 }
 0x26d   :  { %v3592_v11 = vpop.f32.mrf.mxu1 }
 0x26e   :  { %v3593_v12 = vadd.f32 %v3592_v11, %v3552_v10 }
 0x26f   :  { %v3594_v13 = vpop.f32.mrf.mxu1 }
 0x271   :  { %v3595_v14 = vpop.f32.mrf.mxu1 }
 0x276   :  { %v3631_v15 = vpop.f32.mrf.mxu0 }
 0x277   :  { %v3632_v63 = vadd.f32 %v3631_v15, %v3591_v27 }
 0x278   :  { %v3633_v7 = vpop.f32.mrf.mxu0 }
 0x279   :  { %v3634_v16 = vadd.f32 %v3633_v7, %v3593_v12 }
 0x27a   :  { %v3635_v32 = vpop.f32.mrf.mxu0 }
 0x27c   :  { %v3636_v44 = vpop.f32.mrf.mxu0 }
 0x2ab   :  { %v3672_v21 = vpop.f32.mrf.mxu1 }
 0x2ac   :  { %v3673_v25 = vadd.f32 %v3672_v21, %v3632_v63 }
 0x2ad   :  { %v3674_v38 = vpop.f32.mrf.mxu1 }
 0x2ae   :  { %v3675_v29 = vadd.f32 %v3674_v38, %v3634_v16 }
 0x2af   :  { %v3676_v18 = vpop.f32.mrf.mxu1 }
 0x2b1   :  { %v3677_v19 = vpop.f32.mrf.mxu1 }
 0x2b6   :  { %v3713_v20 = vpop.f32.mrf.mxu0 }
 0x2b7   :  { %v3714_v30 = vadd.f32 %v3713_v20, %v3673_v25 }
 0x2b8   :  { %v3715_v33 = vpop.f32.mrf.mxu0 }
 0x2b9   :  { %v3716_v39 = vadd.f32 %v3715_v33, %v3675_v29 }
 0x2ba   :  { %v3717_v23 = vpop.f32.mrf.mxu0 }
 0x2bc   :  { %v3718_v24 = vpop.f32.mrf.mxu0 }
 0x2ea   :  { %v3795_v36 = vpop.f32.mrf.mxu0 }
 0x2eb   :  { %v3754_v31 = vpop.f32.mrf.mxu1 }
 0x2ec   :  { %v3755_v22 = vadd.f32 %v3754_v31, %v3714_v30  ;;  %v3797_v41 = vpop.f32.mrf.mxu0 }
 0x2ed   :  { %v3756_v3 = vpop.f32.mrf.mxu1 }
 0x2ee   :  { %v3796_v42 = vadd.f32 %v3795_v36, %v3755_v22  ;;  %v3757_v45 = vadd.f32 %v3756_v3, %v3716_v39  ;;  %v3799_v49 = vpop.f32.mrf.mxu0 }
 0x2ef   :  { %v3758_v56 = vpop.f32.mrf.mxu1 }
 0x2f0   :  { %vm3804_vm4 = vcmp.gt.f32.partialorder %v3796_v42, 0.0  ;;  %v3808_v47 = vmul.f32 0.1, %v3796_v42  ;;  %v3798_v55 = vadd.f32 %v3797_v41, %v3757_v45  ;;  %v3800_v50 = vpop.f32.mrf.mxu0 }
 0x2f1   :  { %v3759_v34 = vpop.f32.mrf.mxu1 }
 0x2f2   :  { %v3812_v52 = vsel %vm3804_vm4, %v3796_v42, %v3808_v47  ;;  %vm3805_vm5 = vcmp.gt.f32.partialorder %v3798_v55, 0.0  ;;  %v3809_v28 = vmul.f32 0.1, %v3798_v55 }
 0x2f3   :  { %v3838_v9 = vmul.f32 %v3827_v46, %v3812_v52 }
 0x2f4   :  { %v3813_v57 = vsel %vm3805_vm5, %v3798_v55, %v3809_v28 }
 0x2f5   :  { %v3839_v58 = vmul.f32 %v3831_v51, %v3813_v57  ;;  %v3844_v59 = vsel %vm3840_vm3, %v3838_v9, 0.0 }
 0x2f6   :  { %v3845_v60 = vadd.f32 %v3844_v59, %v5418_v17 }
 0x2f7   :  { %v3846_v43 = vsel %vm3840_vm3, %v3839_v58, 0.0 }
 0x2f8   :  { %v3847_v61 = vadd.f32 %v3846_v43, %v3845_v60 }
 0x2fa   :  { %3848 = vadd.xlane.f32.xlu0 %v3847_v61 }
 0x383   :  { %v3849_v35 = vpop.xlane.xlu0 %3848 }
 0x384   :  { %v3857_v37 = vadd.f32 %v4375_v62, %v3849_v35 }
 0x386   :  { %v3858_v0 = vsub.f32 0.0, %v3857_v37 }
 0x388   :  { %v3859_v1 = vmul.f32 1.442695, %v3858_v0 }
 0x38a   :  { %5140 = vpow2.f32 %v3859_v1 }
 0x397   :  { %v5141_v54 = vpop.eup %5140 }
 0x398   :  { %v3861_v48 = vadd.f32 1.0, %v5141_v54 }
 0x39a   :  { %5142 = vrcp.f32 %v3861_v48 }
 0x3a7   :  { %v5143_v2 = vpop.eup %5142 }
 0x3a8   :  { %3865 = vst.msk [vmem:[%s5437_s5] sm:$0xf] %vm3864_vm6, %v5143_v2 }
 0x3a9   :  { %3870 = vsyncpa [#allocation4], 1 }
 0x3aa   :  { %3871 = vsyncpa [#allocation6], 1 }
 0x3ab   :  { %3872 = vsyncpa [#allocation9], 1 }

</bundles_post_ra>
